<compile_context>
chip_gen: v6e
topology: v6e:2x2x1
jax: 0.10.0
libtpu: 0.0.40
codegen_flags: <defaults>
</compile_context>

<pallas_src>
import functools

import numpy as np

import jax
import jax.numpy as jnp
from jax.experimental import pallas as pl
from jax.experimental.pallas import tpu as pltpu


# ----------------------------- tiling heuristics -----------------------------

def _pick_h_strip(H, W, C_out, esize, budget_bytes):
    """Largest row-strip h (h | H) whose flat width h*W keeps output stores
    lane-dense (multiple of 128) and whose (C_out, h*W) block fits the budget."""
    cands = [h for h in range(1, H + 1) if H % h == 0 and (h * W) % 128 == 0]
    if not cands:
        return H  # whole image: block last dim == full dim, always legal
    fitting = [h for h in cands if C_out * h * W * esize <= budget_bytes]
    return max(fitting) if fitting else min(cands)


def _pick_nb(N, per_sample_bytes, budget_bytes):
    """Samples per grid step: amortizes per-grid-step overhead at small shapes."""
    for nb in range(N, 0, -1):
        if N % nb == 0 and nb * per_sample_bytes <= budget_bytes:
            return nb
    return 1


def _pick_hw_tile(HW, cap=4096):
    """Lane-dense spatial tile for the elementwise BN-apply pass."""
    cands = [t for t in range(128, min(HW, cap) + 1, 128) if HW % t == 0]
    return max(cands) if cands else HW


def _vmem_limit(need_bytes):
    """Explicit scoped-VMEM limit: at least the default, at most ~90% of physical."""
    try:
        cap = pltpu.get_tpu_info().vmem_capacity_bytes
    except Exception:
        cap = 64 << 20  # v7x floor
    return int(min(max(int(need_bytes * 1.25) + (2 << 20), 32 << 20), int(cap * 0.9)))


# ------------------------------- conv kernels --------------------------------

def _conv_strip(x_ref, w_ref, b, row0, *, h_strip, W_out, KH, KW, C_in, C_out):
    """Direct conv of one row-strip of one sample.

    Returns the f32 accumulator (C_out, h_strip*W_out): channels on sublanes,
    flattened strip spatial on lanes (lane-dense stores downstream)."""
    T = h_strip * W_out
    rows = h_strip + KH - 1  # strip + (KH-1)-row halo
    # One haloed-strip load per sample; the strip accumulator lives as a value.
    xrows = x_ref[b, pl.ds(row0, rows), :, :]          # (rows, Wp, C_in)
    acc = jnp.zeros((C_out, T), jnp.float32)
    for dj in range(KW):
        # One unaligned slice + leading-dim-collapse reshape per dj
        # (KW relayouts per strip instead of KH*KW).
        xdj = xrows[:, dj:dj + W_out, :].reshape(rows * W_out, C_in)
        for di in range(KH):
            piece = xdj[di * W_out: di * W_out + T, :]  # (T, C_in) row-aligned slice
            # "NT" matmul: contract C_in; result (C_out, T) -- spatial stays on lanes.
            acc += jax.lax.dot_general(
                w_ref[di, dj], piece,
                dimension_numbers=(((1,), (1,)), ((), ())),
                preferred_element_type=jnp.float32)
    return acc


def _conv_bn_stats_kernel(x_ref, w_ref, o_ref, stats_ref, *,
                          Nb, h_strip, W_out, KH, KW, C_in, C_out):
    row0 = pl.program_id(1) * h_strip
    if h_strip % 8 == 0:
        row0 = pl.multiple_of(row0, 8)
    for b in range(Nb):
        acc = _conv_strip(x_ref, w_ref, b, row0, h_strip=h_strip, W_out=W_out,
                          KH=KH, KW=KW, C_in=C_in, C_out=C_out)
        o_ref[b] = acc.astype(o_ref.dtype)
        # Fused per-(sample, strip) BN partial statistics, packed into one store.
        ssum = jnp.sum(acc, axis=1, keepdims=True)
        ssq = jnp.sum(acc * acc, axis=1, keepdims=True)
        stats_ref[b, 0] = jnp.concatenate([ssum, ssq], axis=1)   # (C_out, 2)


def _conv_bias_kernel(x_ref, w_ref, b_ref, o_ref, *,
                      Nb, h_strip, W_out, KH, KW, C_in, C_out):
    row0 = pl.program_id(1) * h_strip
    if h_strip % 8 == 0:
        row0 = pl.multiple_of(row0, 8)
    for b in range(Nb):
        acc = _conv_strip(x_ref, w_ref, b, row0, h_strip=h_strip, W_out=W_out,
                          KH=KH, KW=KW, C_in=C_in, C_out=C_out)
        acc = acc + b_ref[0]                      # (C_out, 1) broadcast over lanes
        o_ref[b] = acc.astype(o_ref.dtype)


# ------------------------------ BN apply kernel -------------------------------

def _bn_apply_kernel(h_ref, scale_ref, shift_ref, o_ref):
    # Pure FMA: per-channel scale/shift were finalized once in the wrapper.
    h = h_ref[...].astype(jnp.float32)
    o_ref[...] = (h * scale_ref[...] + shift_ref[...]).astype(o_ref.dtype)


# --------------------------------- wrapper ------------------------------------

def basic_conv2d(x_nchw, conv_w_oihw, conv_b=None, bn_gamma=None, bn_beta=None, *,
                 bn=True, eps=1e-5, compute_dtype=jnp.float32,
                 out_block_budget_bytes=1 << 20, sample_budget_bytes=1 << 20):
    """Forward pass of BasicConv2d.  Accepts/returns NCHW like the PyTorch module."""
    N, C_in, H, W = x_nchw.shape
    C_out, C_in_w, KH, KW = conv_w_oihw.shape
    assert C_in_w == C_in
    assert KH % 2 == 1 and KW % 2 == 1, "odd kernel sizes only (matches padding=k//2)"
    ph, pw = KH // 2, KW // 2
    Hp, Wp = H + 2 * ph, W + 2 * pw
    HW = H * W
    esize = np.dtype(compute_dtype).itemsize

    h_strip = _pick_h_strip(H, W, C_out, esize, out_block_budget_bytes)
    S = H // h_strip
    T = h_strip * W
    per_sample = (Hp * Wp * C_in + C_out * T) * esize + C_out * T * 4
    Nb = _pick_nb(N, per_sample, sample_budget_bytes)

    # Input glue: NCHW -> NHWC + zero-pad, cast to the carry dtype.
    # TODO(synk): the lane-major (C_in, Hp*Wp) + roll formulation would consume
    # NCHW directly and allow in-kernel edge masking (no wrapper pad/transpose).
    x_pad = jnp.pad(jnp.transpose(x_nchw, (0, 2, 3, 1)).astype(compute_dtype),
                    ((0, 0), (ph, ph), (pw, pw), (0, 0)))
    w_t = jnp.transpose(conv_w_oihw, (2, 3, 0, 1)).astype(compute_dtype)  # (KH,KW,Co,Ci)

    # Explicit VMEM budget for the conv pass (double-buffered blocks + temporaries).
    x_blk = Nb * Hp * Wp * C_in * esize
    w_blk = KH * KW * C_out * C_in * esize
    o_blk = Nb * C_out * T * esize
    s_blk = Nb * C_out * 2 * 4
    tmp = Nb * ((h_strip + KH - 1) * Wp * C_in * esize + C_out * T * 4)
    conv_vmem = _vmem_limit(2 * (x_blk + w_blk + o_blk + s_blk) + tmp)
    conv_cost = pl.CostEstimate(
        flops=2 * N * HW * C_out * C_in * KH * KW,
        transcendentals=0,
        bytes_accessed=int(N * Hp * Wp * C_in * esize + w_blk
                           + N * C_out * HW * esize + N * S * C_out * 2 * 4))
    conv_params = pltpu.CompilerParams(
        dimension_semantics=("parallel", "parallel"),
        vmem_limit_bytes=conv_vmem)

    x_spec = pl.BlockSpec((Nb, Hp, Wp, C_in), lambda n, s: (n, 0, 0, 0))  # revisited over s
    w_spec = pl.BlockSpec((KH, KW, C_out, C_in), lambda n, s: (0, 0, 0, 0))
    o_spec = pl.BlockSpec((Nb, C_out, T), lambda n, s: (n, 0, s))
    grid = (N // Nb, S)

    if bn:
        assert bn_gamma is not None and bn_beta is not None
        # Conv bias (if provided) is dropped: a per-channel constant cancels exactly
        # in the BN mean subtraction -> same forward value as the PyTorch module.
        kern = functools.partial(_conv_bn_stats_kernel, Nb=Nb, h_strip=h_strip,
                                 W_out=W, KH=KH, KW=KW, C_in=C_in, C_out=C_out)
        h, stats = pl.pallas_call(
            kern,
            out_shape=(jax.ShapeDtypeStruct((N, C_out, HW), compute_dtype),
                       jax.ShapeDtypeStruct((N, S, C_out, 2), jnp.float32)),
            grid=grid,
            in_specs=[x_spec, w_spec],
            out_specs=(o_spec,
                       pl.BlockSpec((Nb, 1, C_out, 2), lambda n, s: (n, s, 0, 0))),
            compiler_params=conv_params,
            cost_estimate=conv_cost,
        )(x_pad, w_t)

        # BN finalize hoisted out of the apply kernel (tiny per-channel XLA math).
        # TODO(synk): running_mean/running_var momentum updates (stateful side effect
        # of nn.BatchNorm2d) are not produced; forward values match.
        count = float(N * HW)
        tot = jnp.sum(stats, axis=(0, 1))                       # (C_out, 2)
        mean = tot[:, 0] / count
        var = tot[:, 1] / count - mean * mean                   # biased (train mode)
        inv = jax.lax.rsqrt(var + eps)
        g = bn_gamma.astype(jnp.float32)
        scale = (g * inv).reshape(1, C_out, 1)
        shift = (bn_beta.astype(jnp.float32) - mean * g * inv).reshape(1, C_out, 1)

        hw_tile = _pick_hw_tile(HW)
        a_blk = Nb * C_out * hw_tile * esize
        apply_vmem = _vmem_limit(4 * a_blk + 4 * C_out * 4)
        apply_cost = pl.CostEstimate(
            flops=2 * N * C_out * HW, transcendentals=0,
            bytes_accessed=int(2 * N * C_out * HW * esize + 2 * C_out * 4))
        y = pl.pallas_call(
            _bn_apply_kernel,
            out_shape=jax.ShapeDtypeStruct((N, C_out, HW), compute_dtype),
            grid=(N // Nb, HW // hw_tile),
            in_specs=[pl.BlockSpec((Nb, C_out, hw_tile), lambda n, t: (n, 0, t)),
                      pl.BlockSpec((1, C_out, 1), lambda n, t: (0, 0, 0)),
                      pl.BlockSpec((1, C_out, 1), lambda n, t: (0, 0, 0))],
            out_specs=pl.BlockSpec((Nb, C_out, hw_tile), lambda n, t: (n, 0, t)),
            input_output_aliases={0: 0},   # overwrite h in place
            compiler_params=pltpu.CompilerParams(
                dimension_semantics=("parallel", "parallel"),
                vmem_limit_bytes=apply_vmem),
            cost_estimate=apply_cost,
        )(h, scale, shift)
        return y.reshape(N, C_out, H, W)

    # bn=False path: conv + bias, single pass.
    assert conv_b is not None
    bias = conv_b.astype(jnp.float32).reshape(1, C_out, 1)
    kern = functools.partial(_conv_bias_kernel, Nb=Nb, h_strip=h_strip,
                             W_out=W, KH=KH, KW=KW, C_in=C_in, C_out=C_out)
    h = pl.pallas_call(
        kern,
        out_shape=jax.ShapeDtypeStruct((N, C_out, HW), compute_dtype),
        grid=grid,
        in_specs=[x_spec, w_spec,
                  pl.BlockSpec((1, C_out, 1), lambda n, s: (0, 0, 0))],
        out_specs=o_spec,
        compiler_params=conv_params,
        cost_estimate=conv_cost,
    )(x_pad, w_t, bias)
    return h.reshape(N, C_out, H, W)


if __name__ == "__main__":
    key = jax.random.PRNGKey(0)
    k1, k2, k3, k4, k5 = jax.random.split(key, 5)

    # BasicConv2d(input_dim=4, output_dim=8, kernel_size=(3, 3), bn=True)
    N, C_in, H, W = 2, 4, 16, 16
    C_out, KH, KW = 8, 3, 3

    x = jax.random.normal(k1, (N, C_in, H, W), jnp.float32)
    conv_w = 0.1 * jax.random.normal(k2, (C_out, C_in, KH, KW), jnp.float32)
    conv_b = 0.1 * jax.random.normal(k3, (C_out,), jnp.float32)
    gamma = 1.0 + 0.1 * jax.random.normal(k4, (C_out,), jnp.float32)
    beta = 0.1 * jax.random.normal(k5, (C_out,), jnp.float32)

    # Pure-JAX reference (same semantics as the PyTorch forward).
    ref_conv = jax.lax.conv_general_dilated(
        x, conv_w, window_strides=(1, 1),
        padding=((KH // 2, KH // 2), (KW // 2, KW // 2)),
        dimension_numbers=("NCHW", "OIHW", "NCHW"),
    ) + conv_b.reshape(1, C_out, 1, 1)
    mean = ref_conv.mean(axis=(0, 2, 3), keepdims=True)
    var = ref_conv.var(axis=(0, 2, 3), keepdims=True)            # biased (train mode)
    ref_bn = (ref_conv - mean) / jnp.sqrt(var + 1e-5) * gamma.reshape(1, -1, 1, 1) \
             + beta.reshape(1, -1, 1, 1)

    # --- bn=True, default tiling (single strip, Nb=2 samples per grid step) ---
    fwd_bn = jax.jit(functools.partial(basic_conv2d, bn=True))
    y = jax.block_until_ready(fwd_bn(x, conv_w, conv_b, gamma, beta))
    assert y.shape == (N, C_out, H, W), y.shape
    err = float(jnp.max(jnp.abs(y - ref_bn)))
    assert err < 1e-4, f"bn=True (default tiling) max abs error {err}"

    # --- bn=True, forced multi-strip / single-sample steps (exercises the
    #     row-strip grid axis, halo reads and dynamic row offsets) ---
    fwd_bn_strips = jax.jit(functools.partial(
        basic_conv2d, bn=True, out_block_budget_bytes=4096, sample_budget_bytes=1))
    y_s = jax.block_until_ready(fwd_bn_strips(x, conv_w, conv_b, gamma, beta))
    err_s = float(jnp.max(jnp.abs(y_s - ref_bn)))
    assert err_s < 1e-4, f"bn=True (strip tiling) max abs error {err_s}"

    # --- bn=False path: plain conv + bias ---
    fwd_conv = jax.jit(functools.partial(basic_conv2d, bn=False))
    y2 = jax.block_until_ready(fwd_conv(x, conv_w, conv_b))
    err2 = float(jnp.max(jnp.abs(y2 - ref_conv)))
    assert err2 < 1e-4, f"bn=False max abs error {err2}"

    # --- bn=True with bf16 carry (v6e/v7x HBM-traffic option; looser tolerance) ---
    fwd_bf16 = jax.jit(functools.partial(basic_conv2d, bn=True,
                                         compute_dtype=jnp.bfloat16))
    y3 = jax.block_until_ready(fwd_bf16(x, conv_w, conv_b, gamma, beta))
    err3 = float(jnp.max(jnp.abs(y3.astype(jnp.float32) - ref_bn)))
    assert err3 < 1e-1, f"bn=True bf16 max abs error {err3}"

    print("KERNEL_OK")
</pallas_src>

<mosaic_0001>
module attributes {stable_mosaic.version = 11 : i64} {
  func.func @_conv_bn_stats_kernel(%arg0: i32, %arg1: i32, %arg2: memref<2x18x18x4xf32, #tpu.memory_space<vmem>>, %arg3: memref<3x3x8x4xf32, #tpu.memory_space<vmem>>, %arg4: memref<2x8x256xf32, #tpu.memory_space<vmem>>, %arg5: memref<2x1x8x2xf32, #tpu.memory_space<vmem>>) attributes {dimension_semantics = [#tpu.dimension_semantics<parallel>, #tpu.dimension_semantics<parallel>], iteration_bounds = array<i64: 1, 1>, scalar_prefetch = 0 : i64, scratch_operands = 0 : i64, tpu.core_type = #tpu.core_type<tc>, window_params = [{transform_indices = @transform_0, window_bounds = array<i64: 2, 18, 18, 4>}, {pipeline_mode = #tpu.pipeline_mode<synchronous>, transform_indices = @transform_1, window_bounds = array<i64: 3, 3, 8, 4>}, {transform_indices = @transform_2, window_bounds = array<i64: 2, 8, 256>}, {transform_indices = @transform_3, window_bounds = array<i64: 2, 1, 8, 2>}]} {
    %c16_i32 = arith.constant 16 : i32
    %0 = arith.muli %arg1, %c16_i32 : i32
    %1 = tpu.assume_multiple %0, 8 : i32
    %c0 = arith.constant 0 : index
    %2 = arith.index_cast %1 : i32 to index
    %c0_0 = arith.constant 0 : index
    %c0_1 = arith.constant 0 : index
    %3 = vector.load %arg2[%c0, %2, %c0_0, %c0_1] : memref<2x18x18x4xf32, #tpu.memory_space<vmem>>, vector<1x18x18x4xf32>
    %4 = vector.shape_cast %3 : vector<1x18x18x4xf32> to vector<18x18x4xf32>
    %cst = arith.constant 0.000000e+00 : f32
    %5 = vector.broadcast %cst : f32 to vector<8x256xf32>
    %6 = vector.extract_strided_slice %4 {offsets = [0, 0, 0], sizes = [18, 16, 4], strides = [1, 1, 1]} : vector<18x18x4xf32> to vector<18x16x4xf32>
    %7 = vector.shape_cast %6 : vector<18x16x4xf32> to vector<288x4xf32>
    %8 = vector.extract_strided_slice %7 {offsets = [0, 0], sizes = [256, 4], strides = [1, 1]} : vector<288x4xf32> to vector<256x4xf32>
    %c0_2 = arith.constant 0 : index
    %c0_3 = arith.constant 0 : index
    %c0_4 = arith.constant 0 : index
    %c0_5 = arith.constant 0 : index
    %9 = vector.load %arg3[%c0_2, %c0_3, %c0_4, %c0_5] : memref<3x3x8x4xf32, #tpu.memory_space<vmem>>, vector<1x1x8x4xf32>
    %10 = vector.shape_cast %9 : vector<1x1x8x4xf32> to vector<8x4xf32>
    %cst_6 = arith.constant dense<0.000000e+00> : vector<8x256xf32>
    %11 = tpu.matmul %10, %8, %cst_6 {dimension_numbers = #tpu.dot_dimension_numbers<[1], [1], [0], [0], [0, 0, 1, 0], [], []>} : vector<8x4xf32>, vector<256x4xf32>, vector<8x256xf32> -> vector<8x256xf32>
    %12 = arith.addf %5, %11 : vector<8x256xf32>
    %13 = vector.extract_strided_slice %7 {offsets = [16, 0], sizes = [256, 4], strides = [1, 1]} : vector<288x4xf32> to vector<256x4xf32>
    %c1 = arith.constant 1 : index
    %c0_7 = arith.constant 0 : index
    %c0_8 = arith.constant 0 : index
    %c0_9 = arith.constant 0 : index
    %14 = vector.load %arg3[%c1, %c0_7, %c0_8, %c0_9] : memref<3x3x8x4xf32, #tpu.memory_space<vmem>>, vector<1x1x8x4xf32>
    %15 = vector.shape_cast %14 : vector<1x1x8x4xf32> to vector<8x4xf32>
    %cst_10 = arith.constant dense<0.000000e+00> : vector<8x256xf32>
    %16 = tpu.matmul %15, %13, %cst_10 {dimension_numbers = #tpu.dot_dimension_numbers<[1], [1], [0], [0], [0, 0, 1, 0], [], []>} : vector<8x4xf32>, vector<256x4xf32>, vector<8x256xf32> -> vector<8x256xf32>
    %17 = arith.addf %12, %16 : vector<8x256xf32>
    %18 = vector.extract_strided_slice %7 {offsets = [32, 0], sizes = [256, 4], strides = [1, 1]} : vector<288x4xf32> to vector<256x4xf32>
    %c2 = arith.constant 2 : index
    %c0_11 = arith.constant 0 : index
    %c0_12 = arith.constant 0 : index
    %c0_13 = arith.constant 0 : index
    %19 = vector.load %arg3[%c2, %c0_11, %c0_12, %c0_13] : memref<3x3x8x4xf32, #tpu.memory_space<vmem>>, vector<1x1x8x4xf32>
    %20 = vector.shape_cast %19 : vector<1x1x8x4xf32> to vector<8x4xf32>
    %cst_14 = arith.constant dense<0.000000e+00> : vector<8x256xf32>
    %21 = tpu.matmul %20, %18, %cst_14 {dimension_numbers = #tpu.dot_dimension_numbers<[1], [1], [0], [0], [0, 0, 1, 0], [], []>} : vector<8x4xf32>, vector<256x4xf32>, vector<8x256xf32> -> vector<8x256xf32>
    %22 = arith.addf %17, %21 : vector<8x256xf32>
    %23 = vector.extract_strided_slice %4 {offsets = [0, 1, 0], sizes = [18, 16, 4], strides = [1, 1, 1]} : vector<18x18x4xf32> to vector<18x16x4xf32>
    %24 = vector.shape_cast %23 : vector<18x16x4xf32> to vector<288x4xf32>
    %25 = vector.extract_strided_slice %24 {offsets = [0, 0], sizes = [256, 4], strides = [1, 1]} : vector<288x4xf32> to vector<256x4xf32>
    %c0_15 = arith.constant 0 : index
    %c1_16 = arith.constant 1 : index
    %c0_17 = arith.constant 0 : index
    %c0_18 = arith.constant 0 : index
    %26 = vector.load %arg3[%c0_15, %c1_16, %c0_17, %c0_18] : memref<3x3x8x4xf32, #tpu.memory_space<vmem>>, vector<1x1x8x4xf32>
    %27 = vector.shape_cast %26 : vector<1x1x8x4xf32> to vector<8x4xf32>
    %cst_19 = arith.constant dense<0.000000e+00> : vector<8x256xf32>
    %28 = tpu.matmul %27, %25, %cst_19 {dimension_numbers = #tpu.dot_dimension_numbers<[1], [1], [0], [0], [0, 0, 1, 0], [], []>} : vector<8x4xf32>, vector<256x4xf32>, vector<8x256xf32> -> vector<8x256xf32>
    %29 = arith.addf %22, %28 : vector<8x256xf32>
    %30 = vector.extract_strided_slice %24 {offsets = [16, 0], sizes = [256, 4], strides = [1, 1]} : vector<288x4xf32> to vector<256x4xf32>
    %c1_20 = arith.constant 1 : index
    %c1_21 = arith.constant 1 : index
    %c0_22 = arith.constant 0 : index
    %c0_23 = arith.constant 0 : index
    %31 = vector.load %arg3[%c1_20, %c1_21, %c0_22, %c0_23] : memref<3x3x8x4xf32, #tpu.memory_space<vmem>>, vector<1x1x8x4xf32>
    %32 = vector.shape_cast %31 : vector<1x1x8x4xf32> to vector<8x4xf32>
    %cst_24 = arith.constant dense<0.000000e+00> : vector<8x256xf32>
    %33 = tpu.matmul %32, %30, %cst_24 {dimension_numbers = #tpu.dot_dimension_numbers<[1], [1], [0], [0], [0, 0, 1, 0], [], []>} : vector<8x4xf32>, vector<256x4xf32>, vector<8x256xf32> -> vector<8x256xf32>
    %34 = arith.addf %29, %33 : vector<8x256xf32>
    %35 = vector.extract_strided_slice %24 {offsets = [32, 0], sizes = [256, 4], strides = [1, 1]} : vector<288x4xf32> to vector<256x4xf32>
    %c2_25 = arith.constant 2 : index
    %c1_26 = arith.constant 1 : index
    %c0_27 = arith.constant 0 : index
    %c0_28 = arith.constant 0 : index
    %36 = vector.load %arg3[%c2_25, %c1_26, %c0_27, %c0_28] : memref<3x3x8x4xf32, #tpu.memory_space<vmem>>, vector<1x1x8x4xf32>
    %37 = vector.shape_cast %36 : vector<1x1x8x4xf32> to vector<8x4xf32>
    %cst_29 = arith.constant dense<0.000000e+00> : vector<8x256xf32>
    %38 = tpu.matmul %37, %35, %cst_29 {dimension_numbers = #tpu.dot_dimension_numbers<[1], [1], [0], [0], [0, 0, 1, 0], [], []>} : vector<8x4xf32>, vector<256x4xf32>, vector<8x256xf32> -> vector<8x256xf32>
    %39 = arith.addf %34, %38 : vector<8x256xf32>
    %40 = vector.extract_strided_slice %4 {offsets = [0, 2, 0], sizes = [18, 16, 4], strides = [1, 1, 1]} : vector<18x18x4xf32> to vector<18x16x4xf32>
    %41 = vector.shape_cast %40 : vector<18x16x4xf32> to vector<288x4xf32>
    %42 = vector.extract_strided_slice %41 {offsets = [0, 0], sizes = [256, 4], strides = [1, 1]} : vector<288x4xf32> to vector<256x4xf32>
    %c0_30 = arith.constant 0 : index
    %c2_31 = arith.constant 2 : index
    %c0_32 = arith.constant 0 : index
    %c0_33 = arith.constant 0 : index
    %43 = vector.load %arg3[%c0_30, %c2_31, %c0_32, %c0_33] : memref<3x3x8x4xf32, #tpu.memory_space<vmem>>, vector<1x1x8x4xf32>
    %44 = vector.shape_cast %43 : vector<1x1x8x4xf32> to vector<8x4xf32>
    %cst_34 = arith.constant dense<0.000000e+00> : vector<8x256xf32>
    %45 = tpu.matmul %44, %42, %cst_34 {dimension_numbers = #tpu.dot_dimension_numbers<[1], [1], [0], [0], [0, 0, 1, 0], [], []>} : vector<8x4xf32>, vector<256x4xf32>, vector<8x256xf32> -> vector<8x256xf32>
    %46 = arith.addf %39, %45 : vector<8x256xf32>
    %47 = vector.extract_strided_slice %41 {offsets = [16, 0], sizes = [256, 4], strides = [1, 1]} : vector<288x4xf32> to vector<256x4xf32>
    %c1_35 = arith.constant 1 : index
    %c2_36 = arith.constant 2 : index
    %c0_37 = arith.constant 0 : index
    %c0_38 = arith.constant 0 : index
    %48 = vector.load %arg3[%c1_35, %c2_36, %c0_37, %c0_38] : memref<3x3x8x4xf32, #tpu.memory_space<vmem>>, vector<1x1x8x4xf32>
    %49 = vector.shape_cast %48 : vector<1x1x8x4xf32> to vector<8x4xf32>
    %cst_39 = arith.constant dense<0.000000e+00> : vector<8x256xf32>
    %50 = tpu.matmul %49, %47, %cst_39 {dimension_numbers = #tpu.dot_dimension_numbers<[1], [1], [0], [0], [0, 0, 1, 0], [], []>} : vector<8x4xf32>, vector<256x4xf32>, vector<8x256xf32> -> vector<8x256xf32>
    %51 = arith.addf %46, %50 : vector<8x256xf32>
    %52 = vector.extract_strided_slice %41 {offsets = [32, 0], sizes = [256, 4], strides = [1, 1]} : vector<288x4xf32> to vector<256x4xf32>
    %c2_40 = arith.constant 2 : index
    %c2_41 = arith.constant 2 : index
    %c0_42 = arith.constant 0 : index
    %c0_43 = arith.constant 0 : index
    %53 = vector.load %arg3[%c2_40, %c2_41, %c0_42, %c0_43] : memref<3x3x8x4xf32, #tpu.memory_space<vmem>>, vector<1x1x8x4xf32>
    %54 = vector.shape_cast %53 : vector<1x1x8x4xf32> to vector<8x4xf32>
    %cst_44 = arith.constant dense<0.000000e+00> : vector<8x256xf32>
    %55 = tpu.matmul %54, %52, %cst_44 {dimension_numbers = #tpu.dot_dimension_numbers<[1], [1], [0], [0], [0, 0, 1, 0], [], []>} : vector<8x4xf32>, vector<256x4xf32>, vector<8x256xf32> -> vector<8x256xf32>
    %56 = arith.addf %51, %55 : vector<8x256xf32>
    %c0_45 = arith.constant 0 : index
    %c0_46 = arith.constant 0 : index
    %c0_47 = arith.constant 0 : index
    %57 = vector.load %arg4[%c0_45, %c0_46, %c0_47] : memref<2x8x256xf32, #tpu.memory_space<vmem>>, vector<1x8x256xf32>
    %58 = vector.shape_cast %57 : vector<1x8x256xf32> to vector<8x256xf32>
    %59 = vector.shape_cast %56 : vector<8x256xf32> to vector<1x8x256xf32>
    tpu.vector_store %arg4[%c0_45, %c0_46, %c0_47], %59 {strides = array<i32>} : memref<2x8x256xf32, #tpu.memory_space<vmem>>, vector<1x8x256xf32>,
    %cst_48 = arith.constant dense<0.000000e+00> : vector<8xf32>
    %60 = vector.multi_reduction <add>, %56, %cst_48 [1] : vector<8x256xf32> to vector<8xf32>
    %61 = vector.shape_cast %60 : vector<8xf32> to vector<8x1xf32>
    %62 = arith.mulf %56, %56 : vector<8x256xf32>
    %cst_49 = arith.constant dense<0.000000e+00> : vector<8xf32>
    %63 = vector.multi_reduction <add>, %62, %cst_49 [1] : vector<8x256xf32> to vector<8xf32>
    %64 = vector.shape_cast %63 : vector<8xf32> to vector<8x1xf32>
    %65 = tpu.concatenate %61, %64 in 1 : vector<8x1xf32>, vector<8x1xf32> -> vector<8x2xf32>
    %c0_50 = arith.constant 0 : index
    %c0_51 = arith.constant 0 : index
    %c0_52 = arith.constant 0 : index
    %c0_53 = arith.constant 0 : index
    %66 = vector.load %arg5[%c0_50, %c0_51, %c0_52, %c0_53] : memref<2x1x8x2xf32, #tpu.memory_space<vmem>>, vector<1x1x8x2xf32>
    %67 = vector.shape_cast %66 : vector<1x1x8x2xf32> to vector<8x2xf32>
    %68 = vector.shape_cast %65 : vector<8x2xf32> to vector<1x1x8x2xf32>
    tpu.vector_store %arg5[%c0_50, %c0_51, %c0_52, %c0_53], %68 {strides = array<i32>} : memref<2x1x8x2xf32, #tpu.memory_space<vmem>>, vector<1x1x8x2xf32>,
    %c1_54 = arith.constant 1 : index
    %69 = arith.index_cast %1 : i32 to index
    %c0_55 = arith.constant 0 : index
    %c0_56 = arith.constant 0 : index
    %70 = vector.load %arg2[%c1_54, %69, %c0_55, %c0_56] : memref<2x18x18x4xf32, #tpu.memory_space<vmem>>, vector<1x18x18x4xf32>
    %71 = vector.shape_cast %70 : vector<1x18x18x4xf32> to vector<18x18x4xf32>
    %cst_57 = arith.constant 0.000000e+00 : f32
    %72 = vector.broadcast %cst_57 : f32 to vector<8x256xf32>
    %73 = vector.extract_strided_slice %71 {offsets = [0, 0, 0], sizes = [18, 16, 4], strides = [1, 1, 1]} : vector<18x18x4xf32> to vector<18x16x4xf32>
    %74 = vector.shape_cast %73 : vector<18x16x4xf32> to vector<288x4xf32>
    %75 = vector.extract_strided_slice %74 {offsets = [0, 0], sizes = [256, 4], strides = [1, 1]} : vector<288x4xf32> to vector<256x4xf32>
    %c0_58 = arith.constant 0 : index
    %c0_59 = arith.constant 0 : index
    %c0_60 = arith.constant 0 : index
    %c0_61 = arith.constant 0 : index
    %76 = vector.load %arg3[%c0_58, %c0_59, %c0_60, %c0_61] : memref<3x3x8x4xf32, #tpu.memory_space<vmem>>, vector<1x1x8x4xf32>
    %77 = vector.shape_cast %76 : vector<1x1x8x4xf32> to vector<8x4xf32>
    %cst_62 = arith.constant dense<0.000000e+00> : vector<8x256xf32>
    %78 = tpu.matmul %77, %75, %cst_62 {dimension_numbers = #tpu.dot_dimension_numbers<[1], [1], [0], [0], [0, 0, 1, 0], [], []>} : vector<8x4xf32>, vector<256x4xf32>, vector<8x256xf32> -> vector<8x256xf32>
    %79 = arith.addf %72, %78 : vector<8x256xf32>
    %80 = vector.extract_strided_slice %74 {offsets = [16, 0], sizes = [256, 4], strides = [1, 1]} : vector<288x4xf32> to vector<256x4xf32>
    %c1_63 = arith.constant 1 : index
    %c0_64 = arith.constant 0 : index
    %c0_65 = arith.constant 0 : index
    %c0_66 = arith.constant 0 : index
    %81 = vector.load %arg3[%c1_63, %c0_64, %c0_65, %c0_66] : memref<3x3x8x4xf32, #tpu.memory_space<vmem>>, vector<1x1x8x4xf32>
    %82 = vector.shape_cast %81 : vector<1x1x8x4xf32> to vector<8x4xf32>
    %cst_67 = arith.constant dense<0.000000e+00> : vector<8x256xf32>
    %83 = tpu.matmul %82, %80, %cst_67 {dimension_numbers = #tpu.dot_dimension_numbers<[1], [1], [0], [0], [0, 0, 1, 0], [], []>} : vector<8x4xf32>, vector<256x4xf32>, vector<8x256xf32> -> vector<8x256xf32>
    %84 = arith.addf %79, %83 : vector<8x256xf32>
    %85 = vector.extract_strided_slice %74 {offsets = [32, 0], sizes = [256, 4], strides = [1, 1]} : vector<288x4xf32> to vector<256x4xf32>
    %c2_68 = arith.constant 2 : index
    %c0_69 = arith.constant 0 : index
    %c0_70 = arith.constant 0 : index
    %c0_71 = arith.constant 0 : index
    %86 = vector.load %arg3[%c2_68, %c0_69, %c0_70, %c0_71] : memref<3x3x8x4xf32, #tpu.memory_space<vmem>>, vector<1x1x8x4xf32>
    %87 = vector.shape_cast %86 : vector<1x1x8x4xf32> to vector<8x4xf32>
    %cst_72 = arith.constant dense<0.000000e+00> : vector<8x256xf32>
    %88 = tpu.matmul %87, %85, %cst_72 {dimension_numbers = #tpu.dot_dimension_numbers<[1], [1], [0], [0], [0, 0, 1, 0], [], []>} : vector<8x4xf32>, vector<256x4xf32>, vector<8x256xf32> -> vector<8x256xf32>
    %89 = arith.addf %84, %88 : vector<8x256xf32>
    %90 = vector.extract_strided_slice %71 {offsets = [0, 1, 0], sizes = [18, 16, 4], strides = [1, 1, 1]} : vector<18x18x4xf32> to vector<18x16x4xf32>
    %91 = vector.shape_cast %90 : vector<18x16x4xf32> to vector<288x4xf32>
    %92 = vector.extract_strided_slice %91 {offsets = [0, 0], sizes = [256, 4], strides = [1, 1]} : vector<288x4xf32> to vector<256x4xf32>
    %c0_73 = arith.constant 0 : index
    %c1_74 = arith.constant 1 : index
    %c0_75 = arith.constant 0 : index
    %c0_76 = arith.constant 0 : index
    %93 = vector.load %arg3[%c0_73, %c1_74, %c0_75, %c0_76] : memref<3x3x8x4xf32, #tpu.memory_space<vmem>>, vector<1x1x8x4xf32>
    %94 = vector.shape_cast %93 : vector<1x1x8x4xf32> to vector<8x4xf32>
    %cst_77 = arith.constant dense<0.000000e+00> : vector<8x256xf32>
    %95 = tpu.matmul %94, %92, %cst_77 {dimension_numbers = #tpu.dot_dimension_numbers<[1], [1], [0], [0], [0, 0, 1, 0], [], []>} : vector<8x4xf32>, vector<256x4xf32>, vector<8x256xf32> -> vector<8x256xf32>
    %96 = arith.addf %89, %95 : vector<8x256xf32>
    %97 = vector.extract_strided_slice %91 {offsets = [16, 0], sizes = [256, 4], strides = [1, 1]} : vector<288x4xf32> to vector<256x4xf32>
    %c1_78 = arith.constant 1 : index
    %c1_79 = arith.constant 1 : index
    %c0_80 = arith.constant 0 : index
    %c0_81 = arith.constant 0 : index
    %98 = vector.load %arg3[%c1_78, %c1_79, %c0_80, %c0_81] : memref<3x3x8x4xf32, #tpu.memory_space<vmem>>, vector<1x1x8x4xf32>
    %99 = vector.shape_cast %98 : vector<1x1x8x4xf32> to vector<8x4xf32>
    %cst_82 = arith.constant dense<0.000000e+00> : vector<8x256xf32>
    %100 = tpu.matmul %99, %97, %cst_82 {dimension_numbers = #tpu.dot_dimension_numbers<[1], [1], [0], [0], [0, 0, 1, 0], [], []>} : vector<8x4xf32>, vector<256x4xf32>, vector<8x256xf32> -> vector<8x256xf32>
    %101 = arith.addf %96, %100 : vector<8x256xf32>
    %102 = vector.extract_strided_slice %91 {offsets = [32, 0], sizes = [256, 4], strides = [1, 1]} : vector<288x4xf32> to vector<256x4xf32>
    %c2_83 = arith.constant 2 : index
    %c1_84 = arith.constant 1 : index
    %c0_85 = arith.constant 0 : index
    %c0_86 = arith.constant 0 : index
    %103 = vector.load %arg3[%c2_83, %c1_84, %c0_85, %c0_86] : memref<3x3x8x4xf32, #tpu.memory_space<vmem>>, vector<1x1x8x4xf32>
    %104 = vector.shape_cast %103 : vector<1x1x8x4xf32> to vector<8x4xf32>
    %cst_87 = arith.constant dense<0.000000e+00> : vector<8x256xf32>
    %105 = tpu.matmul %104, %102, %cst_87 {dimension_numbers = #tpu.dot_dimension_numbers<[1], [1], [0], [0], [0, 0, 1, 0], [], []>} : vector<8x4xf32>, vector<256x4xf32>, vector<8x256xf32> -> vector<8x256xf32>
    %106 = arith.addf %101, %105 : vector<8x256xf32>
    %107 = vector.extract_strided_slice %71 {offsets = [0, 2, 0], sizes = [18, 16, 4], strides = [1, 1, 1]} : vector<18x18x4xf32> to vector<18x16x4xf32>
    %108 = vector.shape_cast %107 : vector<18x16x4xf32> to vector<288x4xf32>
    %109 = vector.extract_strided_slice %108 {offsets = [0, 0], sizes = [256, 4], strides = [1, 1]} : vector<288x4xf32> to vector<256x4xf32>
    %c0_88 = arith.constant 0 : index
    %c2_89 = arith.constant 2 : index
    %c0_90 = arith.constant 0 : index
    %c0_91 = arith.constant 0 : index
    %110 = vector.load %arg3[%c0_88, %c2_89, %c0_90, %c0_91] : memref<3x3x8x4xf32, #tpu.memory_space<vmem>>, vector<1x1x8x4xf32>
    %111 = vector.shape_cast %110 : vector<1x1x8x4xf32> to vector<8x4xf32>
    %cst_92 = arith.constant dense<0.000000e+00> : vector<8x256xf32>
    %112 = tpu.matmul %111, %109, %cst_92 {dimension_numbers = #tpu.dot_dimension_numbers<[1], [1], [0], [0], [0, 0, 1, 0], [], []>} : vector<8x4xf32>, vector<256x4xf32>, vector<8x256xf32> -> vector<8x256xf32>
    %113 = arith.addf %106, %112 : vector<8x256xf32>
    %114 = vector.extract_strided_slice %108 {offsets = [16, 0], sizes = [256, 4], strides = [1, 1]} : vector<288x4xf32> to vector<256x4xf32>
    %c1_93 = arith.constant 1 : index
    %c2_94 = arith.constant 2 : index
    %c0_95 = arith.constant 0 : index
    %c0_96 = arith.constant 0 : index
    %115 = vector.load %arg3[%c1_93, %c2_94, %c0_95, %c0_96] : memref<3x3x8x4xf32, #tpu.memory_space<vmem>>, vector<1x1x8x4xf32>
    %116 = vector.shape_cast %115 : vector<1x1x8x4xf32> to vector<8x4xf32>
    %cst_97 = arith.constant dense<0.000000e+00> : vector<8x256xf32>
    %117 = tpu.matmul %116, %114, %cst_97 {dimension_numbers = #tpu.dot_dimension_numbers<[1], [1], [0], [0], [0, 0, 1, 0], [], []>} : vector<8x4xf32>, vector<256x4xf32>, vector<8x256xf32> -> vector<8x256xf32>
    %118 = arith.addf %113, %117 : vector<8x256xf32>
    %119 = vector.extract_strided_slice %108 {offsets = [32, 0], sizes = [256, 4], strides = [1, 1]} : vector<288x4xf32> to vector<256x4xf32>
    %c2_98 = arith.constant 2 : index
    %c2_99 = arith.constant 2 : index
    %c0_100 = arith.constant 0 : index
    %c0_101 = arith.constant 0 : index
    %120 = vector.load %arg3[%c2_98, %c2_99, %c0_100, %c0_101] : memref<3x3x8x4xf32, #tpu.memory_space<vmem>>, vector<1x1x8x4xf32>
    %121 = vector.shape_cast %120 : vector<1x1x8x4xf32> to vector<8x4xf32>
    %cst_102 = arith.constant dense<0.000000e+00> : vector<8x256xf32>
    %122 = tpu.matmul %121, %119, %cst_102 {dimension_numbers = #tpu.dot_dimension_numbers<[1], [1], [0], [0], [0, 0, 1, 0], [], []>} : vector<8x4xf32>, vector<256x4xf32>, vector<8x256xf32> -> vector<8x256xf32>
    %123 = arith.addf %118, %122 : vector<8x256xf32>
    %c1_103 = arith.constant 1 : index
    %c0_104 = arith.constant 0 : index
    %c0_105 = arith.constant 0 : index
    %124 = vector.load %arg4[%c1_103, %c0_104, %c0_105] : memref<2x8x256xf32, #tpu.memory_space<vmem>>, vector<1x8x256xf32>
    %125 = vector.shape_cast %124 : vector<1x8x256xf32> to vector<8x256xf32>
    %126 = vector.shape_cast %123 : vector<8x256xf32> to vector<1x8x256xf32>
    tpu.vector_store %arg4[%c1_103, %c0_104, %c0_105], %126 {strides = array<i32>} : memref<2x8x256xf32, #tpu.memory_space<vmem>>, vector<1x8x256xf32>,
    %cst_106 = arith.constant dense<0.000000e+00> : vector<8xf32>
    %127 = vector.multi_reduction <add>, %123, %cst_106 [1] : vector<8x256xf32> to vector<8xf32>
    %128 = vector.shape_cast %127 : vector<8xf32> to vector<8x1xf32>
    %129 = arith.mulf %123, %123 : vector<8x256xf32>
    %cst_107 = arith.constant dense<0.000000e+00> : vector<8xf32>
    %130 = vector.multi_reduction <add>, %129, %cst_107 [1] : vector<8x256xf32> to vector<8xf32>
    %131 = vector.shape_cast %130 : vector<8xf32> to vector<8x1xf32>
    %132 = tpu.concatenate %128, %131 in 1 : vector<8x1xf32>, vector<8x1xf32> -> vector<8x2xf32>
    %c1_108 = arith.constant 1 : index
    %c0_109 = arith.constant 0 : index
    %c0_110 = arith.constant 0 : index
    %c0_111 = arith.constant 0 : index
    %133 = vector.load %arg5[%c1_108, %c0_109, %c0_110, %c0_111] : memref<2x1x8x2xf32, #tpu.memory_space<vmem>>, vector<1x1x8x2xf32>
    %134 = vector.shape_cast %133 : vector<1x1x8x2xf32> to vector<8x2xf32>
    %135 = vector.shape_cast %132 : vector<8x2xf32> to vector<1x1x8x2xf32>
    tpu.vector_store %arg5[%c1_108, %c0_109, %c0_110, %c0_111], %135 {strides = array<i32>} : memref<2x1x8x2xf32, #tpu.memory_space<vmem>>, vector<1x1x8x2xf32>,
    return
  }
  func.func @transform_0(%arg0: i32, %arg1: i32) -> (i32, i32, i32, i32) {
    %c0_i32 = arith.constant 0 : i32
    %c0_i32_0 = arith.constant 0 : i32
    %c0_i32_1 = arith.constant 0 : i32
    %c0_i32_2 = arith.constant 0 : i32
    return %arg0, %c0_i32, %c0_i32_0, %c0_i32_1 : i32, i32, i32, i32
  }
  func.func @transform_1(%arg0: i32, %arg1: i32) -> (i32, i32, i32, i32) {
    %c0_i32 = arith.constant 0 : i32
    %c0_i32_0 = arith.constant 0 : i32
    %c0_i32_1 = arith.constant 0 : i32
    %c0_i32_2 = arith.constant 0 : i32
    %c0_i32_3 = arith.constant 0 : i32
    return %c0_i32, %c0_i32_0, %c0_i32_1, %c0_i32_2 : i32, i32, i32, i32
  }
  func.func @transform_2(%arg0: i32, %arg1: i32) -> (i32, i32, i32) {
    %c0_i32 = arith.constant 0 : i32
    %c0_i32_0 = arith.constant 0 : i32
    return %arg0, %c0_i32, %arg1 : i32, i32, i32
  }
  func.func @transform_3(%arg0: i32, %arg1: i32) -> (i32, i32, i32, i32) {
    %c0_i32 = arith.constant 0 : i32
    %c0_i32_0 = arith.constant 0 : i32
    %c0_i32_1 = arith.constant 0 : i32
    return %arg0, %arg1, %c0_i32, %c0_i32_0 : i32, i32, i32, i32
  }
}

module attributes {stable_mosaic.version = 11 : i64} {
  func.func @_bn_apply_kernel(%arg0: i32, %arg1: i32, %arg2: memref<2x8x256xf32, #tpu.memory_space<vmem>>, %arg3: memref<1x8x1xf32, #tpu.memory_space<vmem>>, %arg4: memref<1x8x1xf32, #tpu.memory_space<vmem>>, %arg5: memref<2x8x256xf32, #tpu.memory_space<vmem>>) attributes {dimension_semantics = [#tpu.dimension_semantics<parallel>, #tpu.dimension_semantics<parallel>], iteration_bounds = array<i64: 1, 1>, scalar_prefetch = 0 : i64, scratch_operands = 0 : i64, tpu.core_type = #tpu.core_type<tc>, window_params = [{transform_indices = @transform_0, window_bounds = array<i64: 2, 8, 256>}, {pipeline_mode = #tpu.pipeline_mode<synchronous>, transform_indices = @transform_1, window_bounds = array<i64: 1, 8, 1>}, {pipeline_mode = #tpu.pipeline_mode<synchronous>, transform_indices = @transform_2, window_bounds = array<i64: 1, 8, 1>}, {transform_indices = @transform_3, window_bounds = array<i64: 2, 8, 256>}]} {
    %c0 = arith.constant 0 : index
    %c0_0 = arith.constant 0 : index
    %c0_1 = arith.constant 0 : index
    %0 = vector.load %arg2[%c0, %c0_0, %c0_1] : memref<2x8x256xf32, #tpu.memory_space<vmem>>, vector<2x8x256xf32>
    %c0_2 = arith.constant 0 : index
    %c0_3 = arith.constant 0 : index
    %c0_4 = arith.constant 0 : index
    %1 = vector.load %arg3[%c0_2, %c0_3, %c0_4] : memref<1x8x1xf32, #tpu.memory_space<vmem>>, vector<1x8x1xf32>
    %2 = vector.broadcast %1 : vector<1x8x1xf32> to vector<2x8x256xf32>
    %3 = arith.mulf %0, %2 : vector<2x8x256xf32>
    %c0_5 = arith.constant 0 : index
    %c0_6 = arith.constant 0 : index
    %c0_7 = arith.constant 0 : index
    %4 = vector.load %arg4[%c0_5, %c0_6, %c0_7] : memref<1x8x1xf32, #tpu.memory_space<vmem>>, vector<1x8x1xf32>
    %5 = vector.broadcast %4 : vector<1x8x1xf32> to vector<2x8x256xf32>
    %6 = arith.addf %3, %5 : vector<2x8x256xf32>
    %c0_8 = arith.constant 0 : index
    %c0_9 = arith.constant 0 : index
    %c0_10 = arith.constant 0 : index
    %7 = vector.load %arg5[%c0_8, %c0_9, %c0_10] : memref<2x8x256xf32, #tpu.memory_space<vmem>>, vector<2x8x256xf32>
    tpu.vector_store %arg5[%c0_8, %c0_9, %c0_10], %6 {strides = array<i32>} : memref<2x8x256xf32, #tpu.memory_space<vmem>>, vector<2x8x256xf32>,
    return
  }
  func.func @transform_0(%arg0: i32, %arg1: i32) -> (i32, i32, i32) {
    %c0_i32 = arith.constant 0 : i32
    %c0_i32_0 = arith.constant 0 : i32
    return %arg0, %c0_i32, %arg1 : i32, i32, i32
  }
  func.func @transform_1(%arg0: i32, %arg1: i32) -> (i32, i32, i32) {
    %c0_i32 = arith.constant 0 : i32
    %c0_i32_0 = arith.constant 0 : i32
    %c0_i32_1 = arith.constant 0 : i32
    %c0_i32_2 = arith.constant 0 : i32
    return %c0_i32, %c0_i32_0, %c0_i32_1 : i32, i32, i32
  }
  func.func @transform_2(%arg0: i32, %arg1: i32) -> (i32, i32, i32) {
    %c0_i32 = arith.constant 0 : i32
    %c0_i32_0 = arith.constant 0 : i32
    %c0_i32_1 = arith.constant 0 : i32
    %c0_i32_2 = arith.constant 0 : i32
    return %c0_i32, %c0_i32_0, %c0_i32_1 : i32, i32, i32
  }
  func.func @transform_3(%arg0: i32, %arg1: i32) -> (i32, i32, i32) {
    %c0_i32 = arith.constant 0 : i32
    %c0_i32_0 = arith.constant 0 : i32
    return %arg0, %c0_i32, %arg1 : i32, i32, i32
  }
}

</mosaic_0001>

<bundles_post_ra>
// kernel: basic_conv2d.3
= control target key start
LH: loop header
LB: loop body
LE: loop exit
PB: predicated region body
PF: predicated region fallthrough
CT: control target
= control target key end

     0   :  { %v48_v0 = vmov 0   ;;  %s99_s1 = inlined_call_operand.vmem [shape: f32[1,8,1], index: 1, kind: input, shape index: {}]   ;;  %s100_s2 = inlined_call_operand.vmem [shape: f32[1,8,1], index: 2, kind: input, shape index: {}]   ;;  %s101_s0 = inlined_call_operand.vmem [shape: f32[2,8,256], index: 0, kind: input, shape index: {}, may-alias: {0,3}]   ;;  %s102_s3 = inlined_call_operand.vmem [shape: f32[2,8,256], index: 3, kind: output, shape index: {}, may-alias: {0,3}]  }
   0x1   :  { %47 = vset.pattern.permute.xlu0 %v48_v0  ;;  %v18_v1 = vld [vmem:[%s99_s1] sm:$0xff]  ;;  %v15_v5 = vld [vmem:[%s101_s0 + $0x8] sm:$0xff]  ;;  %v16_v6 = vld [vmem:[%s101_s0 + $0x10] sm:$0xff] }
   0x2   :  { %21 = vperm.xlu0 %47, %v18_v1   ;;  %v28_v2 = vld [vmem:[%s100_s2] sm:$0xff]  ;;  %v17_v7 = vld [vmem:[%s101_s0 + $0x18] sm:$0xff] }
   0x3   :  { %v14_v3 = vld [vmem:[%s101_s0] sm:$0xff] }
   0x6   :  { %31 = vperm.xlu0 %47, %v28_v2  }
  0x7d   :  { %v22_v4 = vpop.permute.xlu0 %21 }
  0x7e   :  { %v24_v8 = vmul.f32 %v22_v4, %v14_v3  ;;  %v25_v9 = vmul.f32 %v22_v4, %v15_v5  ;;  %v26_v10 = vmul.f32 %v22_v4, %v16_v6  ;;  %v27_v11 = vmul.f32 %v22_v4, %v17_v7 }
  0x81   :  { %v32_v12 = vpop.permute.xlu0 %31 }
  0x82   :  { %v34_v13 = vadd.f32 %v32_v12, %v24_v8  ;;  %v35_v14 = vadd.f32 %v32_v12, %v25_v9  ;;  %v36_v15 = vadd.f32 %v32_v12, %v26_v10  ;;  %v37_v16 = vadd.f32 %v32_v12, %v27_v11 }
  0x84   :  { %38 = vst [vmem:[%s102_s3] sm:$0xff] %v34_v13  ;;  %39 = vst [vmem:[%s102_s3 + $0x8] sm:$0xff] %v35_v14 }
  0x85   :  { %40 = vst [vmem:[%s102_s3 + $0x10] sm:$0xff] %v36_v15  ;;  %41 = vst [vmem:[%s102_s3 + $0x18] sm:$0xff] %v37_v16 }

// kernel: basic_conv2d.2
= control target key start
LH: loop header
LB: loop body
LE: loop exit
PB: predicated region body
PF: predicated region fallthrough
CT: control target
= control target key end

     0   :  { %vm73_vm0 = vcmask 31744   ;;  %vm426_vm1 = vcmask 1046528   ;;  %vm823_vm2 = vcmask 1045504   ;;  %vm1230_vm3 = vcmask 7168   ;;  %s6183_s0 = inlined_call_operand.vmem [shape: f32[2,18,18,4], index: 0, kind: input, shape index: {}]   ;;  %s6184_s1 = inlined_call_operand.vmem [shape: f32[3,3,8,4], index: 1, kind: input, shape index: {}]   ;;  %s6185_s2 = inlined_call_operand.vmem [shape: f32[2,8,256], index: 2, kind: output, shape index: {0}]   ;;  %s6186_s3 = inlined_call_operand.vmem [shape: f32[2,1,8,2], index: 3, kind: output, shape index: {1}]  }
   0x1   :  { %v3756_v0 = vld [vmem:[%s6183_s0 + $0x188] sm:$0xff]  ;;  %v3761_v1 = vld [vmem:[%s6183_s0 + $0x170] sm:$0xff]  ;;  %v3780_v4 = vld [vmem:[%s6183_s0 + $0x180] sm:$0xff]  ;;  %vm1232_vm4 = vcmask 15360  }
   0x2   :  { %v3766_v2 = vld [vmem:[%s6183_s0 + $0xc8] sm:$0xff]  ;;  %3119 = vmatprep.subr.msk.mxu0 %vm73_vm0, %v3756_v0  ;;  %3153 = vmatprep.subr.msk.mxu1 %vm73_vm0, %v3761_v1  ;;  %v3775_v3 = vld [vmem:[%s6183_s0 + $0xb0] sm:$0xff]  ;;  %v3798_v6 = vld [vmem:[%s6183_s0 + $0xc0] sm:$0xff]  ;;  %v503_v36 = vrot.slane %v3761_v1, 1 }
   0x3   :  { %v3785_v5 = vld [vmem:[%s6183_s0 + $0x168] sm:$0xff]  ;;  %3120 = vmatpush3.xpose.msk.msra.mxu0 %vm73_vm0, %v3766_v2  ;;  %3154 = vmatpush3.xpose.msk.msra.mxu1 %vm73_vm0, %v3775_v3  ;;  %6257 = vst [vmem:[#allocation2_spill] sm:$0xff] %v3798_v6  ;;  %v3808_v8 = vld [vmem:[%s6183_s0 + $0x158] sm:$0xff]  ;;  %v3826_v10 = vld [vmem:[%s6183_s0 + $0x150] sm:$0xff]  ;;  %v463_v40 = vrot.slane %v3775_v3, 1 }
   0x4   :  { %3121 = vmatprep.subr.msk.mxu0 %vm73_vm0, %v3780_v4  ;;  %3155 = vmatprep.subr.msk.mxu1 %vm73_vm0, %v3785_v5  ;;  %v3803_v7 = vld [vmem:[%s6183_s0 + $0xa8] sm:$0xff]  ;;  %6258 = vst [vmem:[#allocation3_spill] sm:$0xff] %v3808_v8  ;;  %v3821_v9 = vld [vmem:[%s6183_s0 + $0x98] sm:$0xff]  ;;  %6260 = vst [vmem:[#allocation5_spill] sm:$0xff] %v3826_v10  ;;  %v502_v44 = vrot.slane %v3785_v5, 1  ;;  %v498_v50 = vrot.slane %v3808_v8, 1 }
   0x5   :  { %6259 = vst [vmem:[#allocation4_spill] sm:$0xff] %v3821_v9  ;;  %v3839_v11 = vld [vmem:[%s6183_s0 + $0x90] sm:$0xff]  ;;  %v3844_v12 = vld [vmem:[%s6184_s1 + $0x18] sm:$0xff]  ;;  %v3849_v13 = vld [vmem:[%s6183_s0 + $0x140] sm:$0xff]  ;;  %v462_v47 = vrot.slane %v3803_v7, 1  ;;  %v458_v56 = vrot.slane %v3821_v9, 1 }
   0x6   :  { %6261 = vst [vmem:[#allocation6_spill] sm:$0xff] %v3839_v11  ;;  %6262 = vst [vmem:[#allocation7_spill] sm:$0xff] %v3849_v13  ;;  %3151 = vmatprep.mubr.msk.f32.mxu0 %vm73_vm0, %v3844_v12  ;;  %v3856_v14 = vld [vmem:[%s6184_s1] sm:$0xff]  ;;  %v3876_v16 = vld [vmem:[%s6183_s0 + $0x138] sm:$0xff]  ;;  %v4107_v49 = vsel %vm426_vm1, %v502_v44, %v503_v36  ;;  %v497_v59 = vrot.slane %v3826_v10, 1  ;;  %v457_v62 = vrot.slane %v3839_v11, 1 }
   0x7   :  { %3122 = vmatpush3.xpose.msk.msra.mxu0 %vm73_vm0, %v3798_v6  ;;  %3156 = vmatpush3.xpose.msk.msra.mxu1 %vm73_vm0, %v3803_v7  ;;  %v3871_v15 = vld [vmem:[%s6183_s0 + $0x80] sm:$0xff]  ;;  %6264 = vst [vmem:[#allocation9_spill] sm:$0xff] %v3876_v16  ;;  %v3889_v17 = vld [vmem:[%s6183_s0 + $0x78] sm:$0xff]  ;;  %v3894_v18 = vld [vmem:[%s6183_s0 + $0x128] sm:$0xff]  ;;  %v4139_v55 = vsel %vm426_vm1, %v462_v47, %v463_v40  ;;  %v492_v47 = vrot.slane %v3876_v16, 1 }
   0x8   :  { %3123 = vmatprep.subr.msk.mxu0 %vm73_vm0, %v3761_v1  ;;  %3157 = vmatprep.subr.msk.mxu1 %vm73_vm0, %v3808_v8  ;;  %6263 = vst [vmem:[#allocation8_spill] sm:$0xff] %v3871_v15  ;;  %6265 = vst [vmem:[#allocation10_spill] sm:$0xff] %v3889_v17  ;;  %v3907_v19 = vld [vmem:[%s6183_s0 + $0x68] sm:$0xff]  ;;  %v3912_v20 = vld [vmem:[%s6183_s0 + $0x120] sm:$0xff]  ;;  %v4169_v63 = vsel %vm426_vm1, %v497_v59, %v498_v50  ;;  %v488_v59 = vrot.slane %v3894_v18, 1 }
   0x9   :  { %3185 = vmatprep.mubr.msk.f32.mxu1 %vm73_vm0, %v3856_v14  ;;  %6266 = vst [vmem:[#allocation11_spill] sm:$0xff] %v3894_v18  ;;  %6267 = vst [vmem:[#allocation12_spill] sm:$0xff] %v3907_v19  ;;  %v3925_v21 = vld [vmem:[%s6183_s0 + $0x60] sm:$0xff]  ;;  %v3930_v22 = vld [vmem:[%s6183_s0 + $0x110] sm:$0xff] }
   0xa   :  { %6268 = vst [vmem:[#allocation13_spill] sm:$0xff] %v3912_v20  ;;  %6269 = vst [vmem:[#allocation14_spill] sm:$0xff] %v3925_v21  ;;  %v3943_v23 = vld [vmem:[%s6183_s0 + $0x50] sm:$0xff]  ;;  %v3948_v24 = vld [vmem:[%s6183_s0 + $0x108] sm:$0xff] }
   0xb   :  { %3124 = vmatpush3.xpose.msk.msra.mxu0 %vm73_vm0, %v3775_v3  ;;  %3158 = vmatpush3.xpose.msk.msra.mxu1 %vm73_vm0, %v3821_v9  ;;  %6270 = vst [vmem:[#allocation15_spill] sm:$0xff] %v3930_v22  ;;  %6271 = vst [vmem:[#allocation16_spill] sm:$0xff] %v3943_v23  ;;  %v3961_v25 = vld [vmem:[%s6183_s0 + $0x48] sm:$0xff]  ;;  %v3966_v26 = vld [vmem:[%s6183_s0 + $0xf8] sm:$0xff] }
   0xc   :  { %3125 = vmatprep.subr.msk.mxu0 %vm73_vm0, %v3785_v5  ;;  %3159 = vmatprep.subr.msk.mxu1 %vm73_vm0, %v3826_v10  ;;  %6272 = vst [vmem:[#allocation17_spill] sm:$0xff] %v3948_v24  ;;  %6273 = vst [vmem:[#allocation18_spill] sm:$0xff] %v3961_v25  ;;  %v3979_v27 = vld [vmem:[%s6183_s0 + $0x38] sm:$0xff]  ;;  %v3984_v28 = vld [vmem:[%s6183_s0 + $0xf0] sm:$0xff] }
   0xd   :  { %v3997_v29 = vld [vmem:[%s6183_s0 + $0x30] sm:$0xff]  ;;  %v4002_v30 = vld [vmem:[%s6183_s0 + $0xe0] sm:$0xff]  ;;  %v4020_v32 = vld [vmem:[%s6183_s0 + $0xd8] sm:$0xff] }
   0xe   :  { %6274 = vst [vmem:[#allocation19_spill] sm:$0xff] %v4002_v30  ;;  %v4015_v31 = vld [vmem:[%s6183_s0 + $0x20] sm:$0xff]  ;;  %6276 = vst [vmem:[#allocation21_spill] sm:$0xff] %v4020_v32  ;;  %v4033_v33 = vld [vmem:[%s6183_s0 + $0x18] sm:$0xff] }
   0xf   :  { %3126 = vmatpush3.xpose.msk.msra.mxu0 %vm73_vm0, %v3803_v7  ;;  %3160 = vmatpush3.xpose.msk.msra.mxu1 %vm73_vm0, %v3839_v11  ;;  %6275 = vst [vmem:[#allocation20_spill] sm:$0xff] %v4015_v31  ;;  %v4038_v34 = vld [vmem:[%s6183_s0 + $0x178] sm:$0x3]  ;;  %v4051_v35 = vld [vmem:[%s6183_s0 + $0x8] sm:$0xff]  ;;  %v4071_v39 = vld [vmem:[%s6183_s0] sm:$0xff] }
  0x10   :  { %3127 = vmatprep.subr.msk.mxu0 %vm73_vm0, %v3808_v8  ;;  %3161 = vmatprep.subr.msk.mxu1 %vm73_vm0, %v3849_v13  ;;  %v505_v37 = vrot.slane %v4038_v34, 1  ;;  %v4058_v38 = vld [vmem:[%s6183_s0 + $0xb8] sm:$0x3]  ;;  %v4078_v42 = vld [vmem:[%s6183_s0 + $0x1a0] sm:$0xff]  ;;  %v4123_v53 = vld [vmem:[%s6184_s1 + $0x30] sm:$0xff] }
  0x11   :  { %v465_v41 = vrot.slane %v4058_v38, 1  ;;  %v4087_v45 = vld [vmem:[%s6183_s0 + $0x160] sm:$0x3]  ;;  %v4104_v48 = vld [vmem:[%s6183_s0 + $0x198] sm:$0xff]  ;;  %v4128_v54 = vld [vmem:[%s6184_s1 + $0x8] sm:$0xff] }
  0x12   :  { %v4081_v43 = vsel %vm426_vm1, %v503_v36, %v505_v37  ;;  %6277 = vst [vmem:[#allocation22_spill] sm:$0xff] %v4087_v45  ;;  %v500_v51 = vrot.slane %v4087_v45, 1  ;;  %v4114_v52 = vld [vmem:[%s6183_s0 + $0xa0] sm:$0x3]  ;;  %v4154_v60 = vld [vmem:[%s6183_s0 + $0x148] sm:$0x3]  ;;  %v4187_v37 = vsel %vm426_vm1, %v457_v62, %v458_v56 }
  0x13   :  { %3128 = vmatpush3.xpose.msk.msra.mxu0 %vm73_vm0, %v3821_v9  ;;  %3162 = vmatpush3.xpose.msk.msra.mxu1 %vm73_vm0, %v3871_v15  ;;  %v4098_v46 = vsel %vm426_vm1, %v463_v40, %v465_v41  ;;  %6278 = vst [vmem:[#allocation23_spill] sm:$0xff] %v4114_v52  ;;  %v460_v57 = vrot.slane %v4114_v52, 1  ;;  %6279 = vst [vmem:[#allocation24_spill] sm:$0xff] %v4154_v60  ;;  %v4176_v36 = vld [vmem:[%s6183_s0 + $0x88] sm:$0x3]  ;;  %v453_v40 = vrot.slane %v3871_v15, 1 }
  0x14   :  { %3129 = vmatprep.subr.msk.mxu0 %vm73_vm0, %v3826_v10  ;;  %3163 = vmatprep.subr.msk.mxu1 %vm73_vm0, %v3876_v16  ;;  %v4144_v58 = vsel %vm426_vm1, %v498_v50, %v500_v51  ;;  %6280 = vst [vmem:[#allocation25_spill] sm:$0xff] %v4176_v36  ;;  %v455_v41 = vrot.slane %v4176_v36, 1  ;;  %v4198_v50 = vld [vmem:[%s6183_s0 + $0x130] sm:$0x3]  ;;  %v487_v36 = vrot.slane %v3912_v20, 1 }
  0x15   :  { %v4165_v61 = vsel %vm426_vm1, %v458_v56, %v460_v57  ;;  %6281 = vst [vmem:[#allocation26_spill] sm:$0xff] %v4198_v50  ;;  %v452_v56 = vrot.slane %v3889_v17, 1  ;;  %v490_v62 = vrot.slane %v4198_v50, 1  ;;  %v4264_v45 = vld [vmem:[%s6183_s0 + $0x58] sm:$0x3] }
  0x16   :  { %v4209_v51 = vsel %vm426_vm1, %v453_v40, %v455_v41  ;;  %v448_v41 = vrot.slane %v3907_v19, 1  ;;  %6284 = vst [vmem:[#allocation29_spill] sm:$0xff] %v4264_v45 }
  0x17   :  { %3130 = vmatpush3.xpose.msk.msra.mxu0 %vm73_vm0, %v3839_v11  ;;  %3164 = vmatpush3.xpose.msk.msra.mxu1 %vm73_vm0, %v3889_v17  ;;  %v4236_v50 = vsel %vm426_vm1, %v488_v59, %v490_v62  ;;  %v4257_v62 = vsel %vm426_vm1, %v487_v36, %v488_v59  ;;  %v443_v59 = vrot.slane %v3943_v23, 1 }
  0x18   :  { %3131 = vmatprep.subr.msk.mxu0 %vm73_vm0, %v3849_v13  ;;  %3165 = vmatprep.subr.msk.mxu1 %vm73_vm0, %v3894_v18 }
  0x1b   :  { %3132 = vmatpush3.xpose.msk.msra.mxu0 %vm73_vm0, %v3871_v15  ;;  %3166 = vmatpush3.xpose.msk.msra.mxu1 %vm73_vm0, %v3907_v19 }
  0x1c   :  { %3133 = vmatprep.subr.msk.mxu0 %vm73_vm0, %v3876_v16  ;;  %3167 = vmatprep.subr.msk.mxu1 %vm73_vm0, %v3912_v20 }
  0x1f   :  { %3134 = vmatpush3.xpose.msk.msra.mxu0 %vm73_vm0, %v3889_v17  ;;  %3168 = vmatpush3.xpose.msk.msra.mxu1 %vm73_vm0, %v3925_v21 }
  0x20   :  { %3135 = vmatprep.subr.msk.mxu0 %vm73_vm0, %v3894_v18  ;;  %3169 = vmatprep.subr.msk.mxu1 %vm73_vm0, %v3930_v22 }
  0x23   :  { %3136 = vmatpush3.xpose.msk.msra.mxu0 %vm73_vm0, %v3907_v19  ;;  %3170 = vmatpush3.xpose.msk.msra.mxu1 %vm73_vm0, %v3943_v23 }
  0x24   :  { %3137 = vmatprep.subr.msk.mxu0 %vm73_vm0, %v3912_v20  ;;  %3171 = vmatprep.subr.msk.mxu1 %vm73_vm0, %v3948_v24 }
  0x27   :  { %3138 = vmatpush3.xpose.msk.msra.mxu0 %vm73_vm0, %v3925_v21  ;;  %3172 = vmatpush3.xpose.msk.msra.mxu1 %vm73_vm0, %v3961_v25 }
  0x28   :  { %3139 = vmatprep.subr.msk.mxu0 %vm73_vm0, %v3930_v22  ;;  %3173 = vmatprep.subr.msk.mxu1 %vm73_vm0, %v3966_v26 }
  0x2b   :  { %3140 = vmatpush3.xpose.msk.msra.mxu0 %vm73_vm0, %v3943_v23  ;;  %3174 = vmatpush3.xpose.msk.msra.mxu1 %vm73_vm0, %v3979_v27 }
  0x2c   :  { %3141 = vmatprep.subr.msk.mxu0 %vm73_vm0, %v3948_v24  ;;  %3175 = vmatprep.subr.msk.mxu1 %vm73_vm0, %v3984_v28 }
  0x2f   :  { %3142 = vmatpush3.xpose.msk.msra.mxu0 %vm73_vm0, %v3961_v25  ;;  %3176 = vmatpush3.xpose.msk.msra.mxu1 %vm73_vm0, %v3997_v29 }
  0x30   :  { %3143 = vmatprep.subr.msk.mxu0 %vm73_vm0, %v3966_v26  ;;  %3177 = vmatprep.subr.msk.mxu1 %vm73_vm0, %v4002_v30 }
  0x33   :  { %3144 = vmatpush3.xpose.msk.msra.mxu0 %vm73_vm0, %v3979_v27  ;;  %3178 = vmatpush3.xpose.msk.msra.mxu1 %vm73_vm0, %v4015_v31 }
  0x34   :  { %3145 = vmatprep.subr.msk.mxu0 %vm73_vm0, %v3984_v28  ;;  %3179 = vmatprep.subr.msk.mxu1 %vm73_vm0, %v4020_v32 }
  0x37   :  { %3146 = vmatpush3.xpose.msk.msra.mxu0 %vm73_vm0, %v3997_v29  ;;  %3180 = vmatpush3.xpose.msk.msra.mxu1 %vm73_vm0, %v4033_v33 }
  0x38   :  { %3147 = vmatprep.subr.msk.mxu0 %vm73_vm0, %v4002_v30  ;;  %3181 = vmatprep.subr.msk.mxu1 %vm73_vm0, %v3766_v2 }
  0x3b   :  { %3148 = vmatpush3.xpose.msk.msra.mxu0 %vm73_vm0, %v4015_v31  ;;  %3182 = vmatpush3.xpose.msk.msra.mxu1 %vm73_vm0, %v4051_v35 }
  0x3c   :  { %3149 = vmatprep.subr.msk.mxu0 %vm73_vm0, %v4020_v32  ;;  %3183 = vmatprep.subr.msk.mxu1 %vm73_vm0, %v3798_v6 }
  0x3f   :  { %3150 = vmatpush3.xpose.msk.msra.mxu0 %vm73_vm0, %v4033_v33  ;;  %3184 = vmatpush3.xpose.msk.msra.mxu1 %vm73_vm0, %v4071_v39 }
  0x40   :  { %3187 = vmatprep.subr.msk.mxu0 %vm73_vm0, %v4078_v42  ;;  %3221 = vmatprep.subr.msk.mxu1 %vm73_vm0, %v4081_v43 }
  0x42   :  { %3152 = vmatmul.mubr.msk.f32.vlgmr.msra.gmra.mxu0 %vm73_vm0, %v3844_v12  ;;  %3186 = vmatmul.mubr.msk.f32.vlgmr.msra.gmra.mxu1 %vm73_vm0, %v3856_v14  ;;  %v493_v12 = vrot.slane %v3849_v13, 1  ;;  %v495_v14 = vrot.slane %v4154_v60, 1  ;;  %v4242_v60 = vld [vmem:[%s6183_s0 + $0x118] sm:$0x3] }
  0x43   :  { %3188 = vmatpush3.xpose.msk.msra.mxu0 %vm73_vm0, %v4002_v30  ;;  %3222 = vmatpush3.xpose.msk.msra.mxu1 %vm73_vm0, %v4098_v46  ;;  %6283 = vst [vmem:[#allocation28_spill] sm:$0xff] %v4242_v60  ;;  %v485_v52 = vrot.slane %v4242_v60, 1 }
  0x44   :  { %3189 = vmatprep.subr.msk.mxu0 %vm73_vm0, %v4104_v48  ;;  %3223 = vmatprep.subr.msk.mxu1 %vm73_vm0, %v4107_v49  ;;  %v4192_v44 = vsel %vm426_vm1, %v493_v12, %v495_v14  ;;  %v4213_v57 = vsel %vm426_vm1, %v492_v47, %v493_v12  ;;  %v4220_v14 = vld [vmem:[%s6183_s0 + $0x70] sm:$0x3]  ;;  %v4231_v12 = vsel %vm426_vm1, %v452_v56, %v453_v40  ;;  %v447_v56 = vrot.slane %v3925_v21, 1 }
  0x45   :  { %3219 = vmatprep.mubr.msk.f32.mxu0 %vm73_vm0, %v4123_v53  ;;  %3253 = vmatprep.mubr.msk.f32.mxu1 %vm73_vm0, %v4128_v54  ;;  %6282 = vst [vmem:[#allocation27_spill] sm:$0xff] %v4220_v14  ;;  %v450_v47 = vrot.slane %v4220_v14, 1  ;;  %v483_v14 = vrot.slane %v3930_v22, 1 }
  0x46   :  { %v4275_v36 = vsel %vm426_vm1, %v447_v56, %v448_v41 }
  0x47   :  { %3190 = vmatpush3.xpose.msk.msra.mxu0 %vm73_vm0, %v4020_v32  ;;  %3224 = vmatpush3.xpose.msk.msra.mxu1 %vm73_vm0, %v4139_v55  ;;  %v4253_v40 = vsel %vm426_vm1, %v448_v41, %v450_v47  ;;  %v445_v47 = vrot.slane %v4264_v45, 1  ;;  %v4280_v60 = vsel %vm426_vm1, %v483_v14, %v485_v52  ;;  %v442_v41 = vrot.slane %v3961_v25, 1 }
  0x48   :  { %3191 = vmatprep.subr.msk.mxu0 %vm73_vm0, %v3756_v0  ;;  %3225 = vmatprep.subr.msk.mxu1 %vm73_vm0, %v4144_v58  ;;  %v478_v45 = vrot.slane %v3966_v26, 1 }
  0x49   :  { %v4297_v52 = vsel %vm426_vm1, %v443_v59, %v445_v47 }
  0x4b   :  { %3192 = vmatpush3.xpose.msk.msra.mxu0 %vm73_vm0, %v3766_v2  ;;  %3226 = vmatpush3.xpose.msk.msra.mxu1 %vm73_vm0, %v4165_v61 }
  0x4c   :  { %3193 = vmatprep.subr.msk.mxu0 %vm73_vm0, %v3780_v4  ;;  %3227 = vmatprep.subr.msk.mxu1 %vm73_vm0, %v4169_v63 }
  0x4f   :  { %3194 = vmatpush3.xpose.msk.msra.mxu0 %vm73_vm0, %v3798_v6  ;;  %3228 = vmatpush3.xpose.msk.msra.mxu1 %vm73_vm0, %v4187_v37 }
  0x50   :  { %3195 = vmatprep.subr.msk.mxu0 %vm73_vm0, %v3761_v1  ;;  %3229 = vmatprep.subr.msk.mxu1 %vm73_vm0, %v4192_v44 }
  0x53   :  { %3196 = vmatpush3.xpose.msk.msra.mxu0 %vm73_vm0, %v3775_v3  ;;  %3230 = vmatpush3.xpose.msk.msra.mxu1 %vm73_vm0, %v4209_v51 }
  0x54   :  { %3197 = vmatprep.subr.msk.mxu0 %vm73_vm0, %v3785_v5  ;;  %3231 = vmatprep.subr.msk.mxu1 %vm73_vm0, %v4213_v57 }
  0x57   :  { %3198 = vmatpush3.xpose.msk.msra.mxu0 %vm73_vm0, %v3803_v7  ;;  %3232 = vmatpush3.xpose.msk.msra.mxu1 %vm73_vm0, %v4231_v12 }
  0x58   :  { %3199 = vmatprep.subr.msk.mxu0 %vm73_vm0, %v3808_v8  ;;  %3233 = vmatprep.subr.msk.mxu1 %vm73_vm0, %v4236_v50  ;;  %v4286_v8 = vld [vmem:[%s6183_s0 + $0x100] sm:$0x3] }
  0x59   :  { %6285 = vst [vmem:[#allocation30_spill] sm:$0xff] %v4286_v8 }
  0x5b   :  { %3200 = vmatpush3.xpose.msk.msra.mxu0 %vm73_vm0, %v3821_v9  ;;  %3234 = vmatpush3.xpose.msk.msra.mxu1 %vm73_vm0, %v4253_v40  ;;  %v482_v9 = vrot.slane %v3948_v24, 1 }
  0x5c   :  { %3201 = vmatprep.subr.msk.mxu0 %vm73_vm0, %v3826_v10  ;;  %3235 = vmatprep.subr.msk.mxu1 %vm73_vm0, %v4257_v62  ;;  %v4308_v10 = vld [vmem:[%s6183_s0 + $0x40] sm:$0x3] }
  0x5d   :  { %v4301_v56 = vsel %vm426_vm1, %v482_v9, %v483_v14  ;;  %6286 = vst [vmem:[#allocation31_spill] sm:$0xff] %v4308_v10  ;;  %v4319_v9 = vsel %vm426_vm1, %v442_v41, %v443_v59  ;;  %v438_v14 = vrot.slane %v3979_v27, 1  ;;  %v440_v47 = vrot.slane %v4308_v10, 1 }
  0x5e   :  { %v437_v59 = vrot.slane %v3997_v29, 1  ;;  %v473_v10 = vrot.slane %v4002_v30, 1  ;;  %v472_v30 = vrot.slane %v4020_v32, 1 }
  0x5f   :  { %3202 = vmatpush3.xpose.msk.msra.mxu0 %vm73_vm0, %v3839_v11  ;;  %3236 = vmatpush3.xpose.msk.msra.mxu1 %vm73_vm0, %v4275_v36  ;;  %v480_v11 = vrot.slane %v4286_v8, 1 }
  0x60   :  { %3203 = vmatprep.subr.msk.mxu0 %vm73_vm0, %v3849_v13  ;;  %3237 = vmatprep.subr.msk.mxu1 %vm73_vm0, %v4280_v60  ;;  %v4330_v13 = vld [vmem:[%s6183_s0 + $0xe8] sm:$0x3]  ;;  %v4390_v32 = vsel %vm426_vm1, %v472_v30, %v473_v10 }
  0x61   :  { %v4324_v8 = vsel %vm426_vm1, %v478_v45, %v480_v11  ;;  %6287 = vst [vmem:[#allocation32_spill] sm:$0xff] %v4330_v13  ;;  %v4341_v11 = vsel %vm426_vm1, %v438_v14, %v440_v47  ;;  %v433_v47 = vrot.slane %v4015_v31, 1 }
  0x63   :  { %3204 = vmatpush3.xpose.msk.msra.mxu0 %vm73_vm0, %v3871_v15  ;;  %3238 = vmatpush3.xpose.msk.msra.mxu1 %vm73_vm0, %v4297_v52  ;;  %v477_v15 = vrot.slane %v3984_v28, 1 }
  0x64   :  { %3205 = vmatprep.subr.msk.mxu0 %vm73_vm0, %v3876_v16  ;;  %3239 = vmatprep.subr.msk.mxu1 %vm73_vm0, %v4301_v56  ;;  %v4352_v16 = vld [vmem:[%s6183_s0 + $0x28] sm:$0x3] }
  0x65   :  { %v4345_v41 = vsel %vm426_vm1, %v477_v15, %v478_v45  ;;  %6288 = vst [vmem:[#allocation33_spill] sm:$0xff] %v4352_v16  ;;  %v4364_v15 = vsel %vm426_vm1, %v437_v59, %v438_v14  ;;  %v435_v45 = vrot.slane %v4352_v16, 1  ;;  %v432_v14 = vrot.slane %v4033_v33, 1 }
  0x66   :  { %v829_v59 = vrot.slane %v4033_v33, 2  ;;  %v468_v16 = vrot.slane %v3766_v2, 1  ;;  %v4397_v33 = vld [vmem:[%s6183_s0 + $0x10] sm:$0x3] }
  0x67   :  { %3206 = vmatpush3.xpose.msk.msra.mxu0 %vm73_vm0, %v3889_v17  ;;  %3240 = vmatpush3.xpose.msk.msra.mxu1 %vm73_vm0, %v4319_v9  ;;  %v475_v17 = vrot.slane %v4330_v13, 1  ;;  %6289 = vst [vmem:[#allocation34_spill] sm:$0xff] %v4397_v33  ;;  %v4410_v30 = vsel %vm426_vm1, %v432_v14, %v433_v47  ;;  %v427_v14 = vrot.slane %v4071_v39, 1 }
  0x68   :  { %3207 = vmatprep.subr.msk.mxu0 %vm73_vm0, %v3894_v18  ;;  %3241 = vmatprep.subr.msk.mxu1 %vm73_vm0, %v4324_v8  ;;  %v467_v18 = vrot.slane %v3798_v6, 1  ;;  %v825_v6 = vrot.slane %v4051_v35, 2 }
  0x69   :  { %v4368_v13 = vsel %vm426_vm1, %v473_v10, %v475_v17  ;;  %v4387_v17 = vsel %vm426_vm1, %v433_v47, %v435_v45  ;;  %v428_v10 = vrot.slane %v4051_v35, 1  ;;  %v430_v45 = vrot.slane %v4397_v33, 1  ;;  %v4428_v47 = vld [vmem:[%s6183_s0 + $0x1a8] sm:$0x3]  ;;  %v4891_v35 = vld [vmem:[%s6183_s0 + $0x338] sm:$0xff] }
  0x6a   :  { %6291 = vst [vmem:[#allocation36_spill] sm:$0xff] %v4428_v47  ;;  %v469_v33 = vsel %vm426_vm1, %v467_v18, %v468_v16  ;;  %v507_v18 = vrot.slane %v3780_v4, 1 }
  0x6b   :  { %3208 = vmatpush3.xpose.msk.msra.mxu0 %vm73_vm0, %v3907_v19  ;;  %3242 = vmatpush3.xpose.msk.msra.mxu1 %vm73_vm0, %v4341_v11  ;;  %v4374_v19 = vld [vmem:[%s6183_s0 + $0xd0] sm:$0x3] }
  0x6c   :  { %3209 = vmatprep.subr.msk.mxu0 %vm73_vm0, %v3912_v20  ;;  %3243 = vmatprep.subr.msk.mxu1 %vm73_vm0, %v4345_v41 }
  0x6f   :  { %3210 = vmatpush3.xpose.msk.msra.mxu0 %vm73_vm0, %v3925_v21  ;;  %3244 = vmatpush3.xpose.msk.msra.mxu1 %vm73_vm0, %v4364_v15  ;;  %v470_v21 = vrot.slane %v4374_v19, 1 }
  0x70   :  { %3211 = vmatprep.subr.msk.mxu0 %vm73_vm0, %v3930_v22  ;;  %3245 = vmatprep.subr.msk.mxu1 %vm73_vm0, %v4368_v13  ;;  %v6216_v22 = vrot.slane %v4015_v31, 2 }
  0x71   :  { %v471_v20 = vsel %vm426_vm1, %v468_v16, %v470_v21  ;;  %v508_v21 = vrot.slane %v3756_v0, 1 }
  0x73   :  { %3212 = vmatpush3.xpose.msk.msra.mxu0 %vm73_vm0, %v3943_v23  ;;  %3246 = vmatpush3.xpose.msk.msra.mxu1 %vm73_vm0, %v4387_v17  ;;  %v4416_v23 = vsel %vm823_vm2, %v829_v59, %v6216_v22  ;;  %v824_v59 = vrot.slane %v4071_v39, 2  ;;  %v431_v22 = vsel %vm426_vm1, %v428_v10, %v430_v45  ;;  %v429_v39 = vsel %vm426_vm1, %v427_v14, %v428_v10 }
  0x74   :  { %3213 = vmatprep.subr.msk.mxu0 %vm73_vm0, %v3948_v24  ;;  %3247 = vmatprep.subr.msk.mxu1 %vm73_vm0, %v4390_v32  ;;  %6290 = vst [vmem:[#allocation35_spill] sm:$0xff] %v4416_v23  ;;  %v4423_v24 = vld [vmem:[%s6183_s0 + $0x190] sm:$0x3]  ;;  %v513_v23 = vrot.slane %v4078_v42, 1  ;;  %v512_v45 = vrot.slane %v4104_v48, 1  ;;  %v909_v10 = vrot.slane %v4104_v48, 2  ;;  %v509_v14 = vsel %vm426_vm1, %v507_v18, %v508_v21 }
  0x75   :  { %v510_v31 = vrot.slane %v4423_v24, 1  ;;  %v4456_v16 = vsel %vm823_vm2, %v824_v59, %v825_v6  ;;  %v910_v48 = vrot.slane %v4078_v42, 2  ;;  %v6302_v18 = vld [vmem:[#allocation25_spill] sm:$0xff]  ;;  %v4908_v42 = vld [vmem:[%s6183_s0 + $0x330] sm:$0xff] }
  0x76   :  { %v514_v59 = vsel %vm426_vm1, %v512_v45, %v513_v23  ;;  %v852_v45 = vrot.slane %v6302_v18, 2 }
  0x77   :  { %3214 = vmatpush3.xpose.msk.msra.mxu0 %vm73_vm0, %v3961_v25  ;;  %3248 = vmatpush3.xpose.msk.msra.mxu1 %vm73_vm0, %v4410_v30  ;;  %v515_v25 = vrot.slane %v4428_v47, 1  ;;  %v511_v47 = vsel %vm426_vm1, %v508_v21, %v510_v31  ;;  %v4482_v31 = vld [vmem:[%s6184_s1 + $0x38] sm:$0xff]  ;;  %v6301_v21 = vld [vmem:[#allocation8_spill] sm:$0xff] }
  0x78   :  { %3215 = vmatprep.subr.msk.mxu0 %vm73_vm0, %v3966_v26  ;;  %3249 = vmatprep.subr.msk.mxu1 %vm73_vm0, %v471_v20 }
  0x7b   :  { %3216 = vmatpush3.xpose.msk.msra.mxu0 %vm73_vm0, %v3979_v27  ;;  %3250 = vmatpush3.xpose.msk.msra.mxu1 %vm73_vm0, %v431_v22  ;;  %v516_v22 = vsel %vm426_vm1, %v513_v23, %v515_v25  ;;  %v4477_v25 = vld [vmem:[%s6184_s1 + $0x20] sm:$0xff]  ;;  %v4497_v23 = vsel %vm823_vm2, %v909_v10, %v910_v48  ;;  %v6303_v10 = vld [vmem:[#allocation9_spill] sm:$0xff] }
  0x7c   :  { %3217 = vmatprep.subr.msk.mxu0 %vm73_vm0, %v3984_v28  ;;  %3251 = vmatprep.subr.msk.mxu1 %vm73_vm0, %v469_v33 }
  0x7f   :  { %3218 = vmatpush3.xpose.msk.msra.mxu0 %vm73_vm0, %v3997_v29  ;;  %3252 = vmatpush3.xpose.msk.msra.mxu1 %vm73_vm0, %v429_v39  ;;  %v850_v39 = vrot.slane %v6301_v21, 2 }
  0x80   :  { %3255 = vmatprep.subr.msk.mxu0 %vm73_vm0, %v511_v47  ;;  %3289 = vmatprep.subr.msk.mxu1 %vm73_vm0, %v516_v22 }
  0x82   :  { %3220 = vmatmul.mubr.msk.f32.vlgmr.msra.gmra.mxu0 %vm73_vm0, %v4123_v53  ;;  %3254 = vmatmul.mubr.msk.f32.vlgmr.msra.gmra.mxu1 %vm73_vm0, %v4128_v54  ;;  %v867_v54 = vrot.slane %v4374_v19, 2  ;;  %v899_v19 = vrot.slane %v3785_v5, 2  ;;  %v6292_v5 = vld [vmem:[#allocation2_spill] sm:$0xff] }
  0x83   :  { %3256 = vmatpush3.xpose.msk.msra.mxu0 %vm73_vm0, %v471_v20  ;;  %3290 = vmatpush3.xpose.msk.msra.mxu1 %vm73_vm0, %v4368_v13  ;;  %6328 = vst [vmem:[#allocation2_spill] sm:$0xff] %v4891_v35 }
  0x84   :  { %3257 = vmatprep.subr.msk.mxu0 %vm73_vm0, %v509_v14  ;;  %3291 = vmatprep.subr.msk.mxu1 %vm73_vm0, %v514_v59  ;;  %v4727_v59 = vsel %vm823_vm2, %v850_v39, %v852_v45 }
  0x85   :  { %3287 = vmatprep.mubr.msk.f32.mxu0 %vm73_vm0, %v4477_v25  ;;  %3321 = vmatprep.mubr.msk.f32.mxu1 %vm73_vm0, %v4482_v31 }
  0x87   :  { %3258 = vmatpush3.xpose.msk.msra.mxu0 %vm73_vm0, %v469_v33  ;;  %3292 = vmatpush3.xpose.msk.msra.mxu1 %vm73_vm0, %v4390_v32 }
  0x88   :  { %3259 = vmatprep.subr.msk.mxu0 %vm73_vm0, %v4081_v43  ;;  %3293 = vmatprep.subr.msk.mxu1 %vm73_vm0, %v511_v47 }
  0x8b   :  { %3260 = vmatpush3.xpose.msk.msra.mxu0 %vm73_vm0, %v4098_v46  ;;  %3294 = vmatpush3.xpose.msk.msra.mxu1 %vm73_vm0, %v471_v20  ;;  %v905_v20 = vrot.slane %v3756_v0, 2  ;;  %v860_v0 = vrot.slane %v3775_v3, 2 }
  0x8c   :  { %3261 = vmatprep.subr.msk.mxu0 %vm73_vm0, %v4107_v49  ;;  %3295 = vmatprep.subr.msk.mxu1 %vm73_vm0, %v509_v14  ;;  %v889_v14 = vrot.slane %v6303_v10, 2  ;;  %v875_v10 = vrot.slane %v3966_v26, 2  ;;  %v6318_v26 = vld [vmem:[#allocation31_spill] sm:$0xff] }
  0x8f   :  { %3262 = vmatpush3.xpose.msk.msra.mxu0 %vm73_vm0, %v4139_v55  ;;  %3296 = vmatpush3.xpose.msk.msra.mxu1 %vm73_vm0, %v469_v33  ;;  %v6300_v33 = vld [vmem:[#allocation24_spill] sm:$0xff] }
  0x90   :  { %3263 = vmatprep.subr.msk.mxu0 %vm73_vm0, %v4144_v58  ;;  %3297 = vmatprep.subr.msk.mxu1 %vm73_vm0, %v4081_v43  ;;  %v900_v43 = vrot.slane %v3761_v1, 2  ;;  %v862_v1 = vrot.slane %v4058_v38, 2 }
  0x92   :  { %v4639_v38 = vsel %vm823_vm2, %v899_v19, %v900_v43 }
  0x93   :  { %3264 = vmatpush3.xpose.msk.msra.mxu0 %vm73_vm0, %v4165_v61  ;;  %3298 = vmatpush3.xpose.msk.msra.mxu1 %vm73_vm0, %v4098_v46  ;;  %v902_v46 = vrot.slane %v4038_v34, 2 }
  0x94   :  { %3265 = vmatprep.subr.msk.mxu0 %vm73_vm0, %v4169_v63  ;;  %3299 = vmatprep.subr.msk.mxu1 %vm73_vm0, %v4107_v49  ;;  %v907_v49 = vrot.slane %v4423_v24, 2 }
  0x95   :  { %v4616_v24 = vsel %vm823_vm2, %v900_v43, %v902_v46  ;;  %v6305_v43 = vld [vmem:[#allocation11_spill] sm:$0xff] }
  0x96   :  { %v4619_v34 = vsel %vm823_vm2, %v905_v20, %v907_v49  ;;  %v885_v46 = vrot.slane %v6305_v43, 2  ;;  %v6306_v49 = vld [vmem:[#allocation26_spill] sm:$0xff]  ;;  %v835_v43 = vrot.slane %v3979_v27, 2 }
  0x97   :  { %3266 = vmatpush3.xpose.msk.msra.mxu0 %vm73_vm0, %v4187_v37  ;;  %3300 = vmatpush3.xpose.msk.msra.mxu1 %vm73_vm0, %v4139_v55 }
  0x98   :  { %3267 = vmatprep.subr.msk.mxu0 %vm73_vm0, %v4192_v44  ;;  %3301 = vmatprep.subr.msk.mxu1 %vm73_vm0, %v4144_v58  ;;  %v6293_v58 = vld [vmem:[#allocation3_spill] sm:$0xff] }
  0x9b   :  { %3268 = vmatpush3.xpose.msk.msra.mxu0 %vm73_vm0, %v4209_v51  ;;  %3302 = vmatpush3.xpose.msk.msra.mxu1 %vm73_vm0, %v4165_v61  ;;  %v6294_v61 = vld [vmem:[#allocation22_spill] sm:$0xff] }
  0x9c   :  { %3269 = vmatprep.subr.msk.mxu0 %vm73_vm0, %v4213_v57  ;;  %3303 = vmatprep.subr.msk.mxu1 %vm73_vm0, %v4169_v63  ;;  %v897_v63 = vrot.slane %v6294_v61, 2 }
  0x9f   :  { %3270 = vmatpush3.xpose.msk.msra.mxu0 %vm73_vm0, %v4231_v12  ;;  %3304 = vmatpush3.xpose.msk.msra.mxu1 %vm73_vm0, %v4187_v37  ;;  %v4658_v37 = vld [vmem:[%s6184_s1 + $0x28] sm:$0xff] }
  0xa0   :  { %3271 = vmatprep.subr.msk.mxu0 %vm73_vm0, %v4236_v50  ;;  %3305 = vmatprep.subr.msk.mxu1 %vm73_vm0, %v4192_v44 }
  0xa3   :  { %3272 = vmatpush3.xpose.msk.msra.mxu0 %vm73_vm0, %v4253_v40  ;;  %3306 = vmatpush3.xpose.msk.msra.mxu1 %vm73_vm0, %v4209_v51  ;;  %v6295_v51 = vld [vmem:[#allocation4_spill] sm:$0xff] }
  0xa4   :  { %3273 = vmatprep.subr.msk.mxu0 %vm73_vm0, %v4257_v62  ;;  %3307 = vmatprep.subr.msk.mxu1 %vm73_vm0, %v4213_v57  ;;  %v855_v57 = vrot.slane %v6295_v51, 2  ;;  %v6311_v51 = vld [vmem:[#allocation15_spill] sm:$0xff] }
  0xa7   :  { %3274 = vmatpush3.xpose.msk.msra.mxu0 %vm73_vm0, %v4275_v36  ;;  %3308 = vmatpush3.xpose.msk.msra.mxu1 %vm73_vm0, %v4231_v12  ;;  %v6296_v12 = vld [vmem:[#allocation23_spill] sm:$0xff] }
  0xa8   :  { %3275 = vmatprep.subr.msk.mxu0 %vm73_vm0, %v4280_v60  ;;  %3309 = vmatprep.subr.msk.mxu1 %vm73_vm0, %v4236_v50 }
  0xab   :  { %3276 = vmatpush3.xpose.msk.msra.mxu0 %vm73_vm0, %v4297_v52  ;;  %3310 = vmatpush3.xpose.msk.msra.mxu1 %vm73_vm0, %v4253_v40  ;;  %v857_v40 = vrot.slane %v6296_v12, 2  ;;  %v6312_v12 = vld [vmem:[#allocation28_spill] sm:$0xff] }
  0xac   :  { %3277 = vmatprep.subr.msk.mxu0 %vm73_vm0, %v4301_v56  ;;  %3311 = vmatprep.subr.msk.mxu1 %vm73_vm0, %v4257_v62 }
  0xaf   :  { %3278 = vmatpush3.xpose.msk.msra.mxu0 %vm73_vm0, %v4319_v9  ;;  %3312 = vmatpush3.xpose.msk.msra.mxu1 %vm73_vm0, %v4275_v36  ;;  %v6297_v36 = vld [vmem:[#allocation5_spill] sm:$0xff] }
  0xb0   :  { %3279 = vmatprep.subr.msk.mxu0 %vm73_vm0, %v4324_v8  ;;  %3313 = vmatprep.subr.msk.mxu1 %vm73_vm0, %v4280_v60  ;;  %v895_v60 = vrot.slane %v6293_v58, 2 }
  0xb2   :  { %v4677_v62 = vsel %vm823_vm2, %v895_v60, %v897_v63 }
  0xb3   :  { %3280 = vmatpush3.xpose.msk.msra.mxu0 %vm73_vm0, %v4341_v11  ;;  %3314 = vmatpush3.xpose.msk.msra.mxu1 %vm73_vm0, %v4297_v52  ;;  %v894_v52 = vrot.slane %v6297_v36, 2 }
  0xb4   :  { %3281 = vmatprep.subr.msk.mxu0 %vm73_vm0, %v4345_v41  ;;  %3315 = vmatprep.subr.msk.mxu1 %vm73_vm0, %v4301_v56  ;;  %v4693_v56 = vsel %vm823_vm2, %v855_v57, %v857_v40  ;;  %v882_v40 = vrot.slane %v6312_v12, 2  ;;  %v6323_v12 = vld [vmem:[#allocation20_spill] sm:$0xff] }
  0xb7   :  { %3282 = vmatpush3.xpose.msk.msra.mxu0 %vm73_vm0, %v4364_v15  ;;  %3316 = vmatpush3.xpose.msk.msra.mxu1 %vm73_vm0, %v4319_v9  ;;  %v6298_v9 = vld [vmem:[#allocation6_spill] sm:$0xff] }
  0xb8   :  { %3283 = vmatprep.subr.msk.mxu0 %vm73_vm0, %v4368_v13  ;;  %3317 = vmatprep.subr.msk.mxu1 %vm73_vm0, %v4324_v8  ;;  %v865_v8 = vrot.slane %v3766_v2, 2  ;;  %v904_v13 = vrot.slane %v3780_v4, 2  ;;  %v4631_v2 = vsel %vm823_vm2, %v860_v0, %v862_v1  ;;  %v859_v4 = vrot.slane %v3803_v7, 2  ;;  %v4653_v7 = vld [vmem:[%s6184_s1 + $0x10] sm:$0xff] }
  0xb9   :  { %v6307_v1 = vld [vmem:[#allocation12_spill] sm:$0xff] }
  0xba   :  { %v4634_v3 = vsel %vm823_vm2, %v865_v8, %v867_v54  ;;  %v4642_v55 = vsel %vm823_vm2, %v904_v13, %v905_v20  ;;  %v4669_v44 = vsel %vm823_vm2, %v859_v4, %v860_v0  ;;  %v887_v54 = vrot.slane %v6306_v49, 2  ;;  %v6308_v13 = vld [vmem:[#allocation27_spill] sm:$0xff] }
  0xbb   :  { %3284 = vmatpush3.xpose.msk.msra.mxu0 %vm73_vm0, %v4387_v17  ;;  %3318 = vmatpush3.xpose.msk.msra.mxu1 %vm73_vm0, %v4341_v11  ;;  %v854_v11 = vrot.slane %v6298_v9, 2  ;;  %v847_v19 = vrot.slane %v6308_v13, 2 }
  0xbc   :  { %3285 = vmatprep.subr.msk.mxu0 %vm73_vm0, %v4390_v32  ;;  %3319 = vmatprep.subr.msk.mxu1 %vm73_vm0, %v4345_v41  ;;  %v864_v32 = vrot.slane %v6292_v5, 2  ;;  %v4697_v41 = vsel %vm823_vm2, %v894_v52, %v895_v60  ;;  %v4749_v4 = vsel %vm823_vm2, %v885_v46, %v887_v54  ;;  %v6309_v5 = vld [vmem:[#allocation13_spill] sm:$0xff]  ;;  %v6310_v60 = vld [vmem:[#allocation14_spill] sm:$0xff]  ;;  %v6313_v52 = vld [vmem:[#allocation16_spill] sm:$0xff]  ;;  %v874_v54 = vrot.slane %v3984_v28, 2 }
  0xbd   :  { %v4710_v47 = vsel %vm823_vm2, %v854_v11, %v855_v57  ;;  %v844_v61 = vrot.slane %v6310_v60, 2  ;;  %v880_v57 = vrot.slane %v6311_v51, 2  ;;  %v840_v9 = vrot.slane %v6313_v52, 2  ;;  %v6314_v11 = vld [vmem:[#allocation29_spill] sm:$0xff]  ;;  %v6319_v28 = vld [vmem:[#allocation19_spill] sm:$0xff] }
  0xbe   :  { %v4672_v50 = vsel %vm823_vm2, %v864_v32, %v865_v8  ;;  %v845_v8 = vrot.slane %v6307_v1, 2  ;;  %v884_v32 = vrot.slane %v6309_v5, 2  ;;  %v834_v1 = vrot.slane %v3997_v29, 2  ;;  %v6322_v51 = vld [vmem:[#allocation21_spill] sm:$0xff] }
  0xbf   :  { %3286 = vmatpush3.xpose.msk.msra.mxu0 %vm73_vm0, %v4410_v30  ;;  %3320 = vmatpush3.xpose.msk.msra.mxu1 %vm73_vm0, %v4364_v15  ;;  %v6299_v15 = vld [vmem:[#allocation7_spill] sm:$0xff]  ;;  %v892_v30 = vrot.slane %v6300_v33, 2  ;;  %v6315_v33 = vld [vmem:[#allocation17_spill] sm:$0xff]  ;;  %v870_v13 = vrot.slane %v6319_v28, 2 }
  0xc0   :  { %3323 = vmatprep.subr.msk.mxu0 %vm73_vm0, %v4616_v24  ;;  %3357 = vmatprep.subr.msk.mxu1 %vm73_vm0, %v4619_v34  ;;  %v890_v17 = vrot.slane %v6299_v15, 2  ;;  %v4761_v58 = vsel %vm823_vm2, %v845_v8, %v847_v19  ;;  %v4765_v63 = vsel %vm823_vm2, %v884_v32, %v885_v46  ;;  %v4778_v36 = vsel %vm823_vm2, %v844_v61, %v845_v8  ;;  %v6320_v19 = vld [vmem:[#allocation32_spill] sm:$0xff]  ;;  %v6321_v32 = vld [vmem:[#allocation33_spill] sm:$0xff] }
  0xc1   :  { %v842_v15 = vrot.slane %v6314_v11, 2  ;;  %v837_v46 = vrot.slane %v6318_v26, 2  ;;  %v4833_v8 = vsel %vm823_vm2, %v874_v54, %v875_v10  ;;  %v872_v5 = vrot.slane %v6320_v19, 2  ;;  %v6325_v11 = vld [vmem:[#allocation34_spill] sm:$0xff]  ;;  %v5207_v26 = vld [vmem:[%s6183_s0 + $0x348] sm:$0xff] }
  0xc2   :  { %3288 = vmatmul.mubr.msk.f32.vlgmr.msra.gmra.mxu0 %vm73_vm0, %v4477_v25  ;;  %3322 = vmatmul.mubr.msk.f32.vlgmr.msra.gmra.mxu1 %vm73_vm0, %v4482_v31  ;;  %v4715_v22 = vsel %vm823_vm2, %v890_v17, %v892_v30  ;;  %v6304_v25 = vld [vmem:[#allocation10_spill] sm:$0xff]  ;;  %v4731_v20 = vsel %vm823_vm2, %v889_v14, %v890_v17  ;;  %v4783_v17 = vsel %vm823_vm2, %v880_v57, %v882_v40  ;;  %v879_v30 = vrot.slane %v6315_v33, 2  ;;  %v6326_v33 = vld [vmem:[#allocation35_spill] sm:$0xff] }
  0xc3   :  { %3324 = vmatpush3.xpose.msk.msra.mxu0 %vm73_vm0, %v4631_v2  ;;  %3358 = vmatpush3.xpose.msk.msra.mxu1 %vm73_vm0, %v4634_v3  ;;  %v849_v31 = vrot.slane %v6304_v25, 2  ;;  %v4795_v21 = vsel %vm823_vm2, %v840_v9, %v842_v15  ;;  %v6317_v14 = vld [vmem:[#allocation30_spill] sm:$0xff]  ;;  %v4829_v27 = vsel %vm823_vm2, %v835_v43, %v837_v46  ;;  %v4846_v29 = vsel %vm823_vm2, %v834_v1, %v835_v43  ;;  %v5194_v43 = vld [vmem:[%s6183_s0 + $0x350] sm:$0xff] }
  0xc4   :  { %3325 = vmatprep.subr.msk.mxu0 %vm73_vm0, %v4639_v38  ;;  %3359 = vmatprep.subr.msk.mxu1 %vm73_vm0, %v4642_v55  ;;  %v4799_v45 = vsel %vm823_vm2, %v879_v30, %v880_v57  ;;  %v877_v25 = vrot.slane %v6317_v14, 2  ;;  %v832_v60 = vrot.slane %v6321_v32, 2  ;;  %v873_v61 = vsel %vm823_vm2, %v870_v13, %v872_v5  ;;  %v4960_v14 = vld [vmem:[%s6183_s0 + $0x318] sm:$0xff]  ;;  %v5216_v46 = vld [vmem:[%s6184_s1] sm:$0xff]  ;;  %v5374_v5 = vld [vmem:[%s6183_s0 + $0x1b0] sm:$0xff] }
  0xc5   :  { %3355 = vmatprep.mubr.msk.f32.mxu0 %vm73_vm0, %v4653_v7  ;;  %3389 = vmatprep.mubr.msk.f32.mxu1 %vm73_vm0, %v4658_v37  ;;  %v4744_v0 = vsel %vm823_vm2, %v849_v31, %v850_v39  ;;  %v6316_v39 = vld [vmem:[#allocation18_spill] sm:$0xff]  ;;  %v869_v57 = vrot.slane %v6322_v51, 2  ;;  %v6324_v40 = vrot.slane %v6323_v12, 2  ;;  %v827_v15 = vrot.slane %v6325_v11, 2  ;;  %6336 = vst [vmem:[#allocation24_spill] sm:$0xff] %v5374_v5 }
  0xc6   :  { %v839_v18 = vrot.slane %v6316_v39, 2  ;;  %v4817_v49 = vsel %vm823_vm2, %v875_v10, %v877_v25  ;;  %v6327_v39 = vld [vmem:[#allocation36_spill] sm:$0xff]  ;;  %v4978_v25 = vld [vmem:[%s6183_s0 + $0x308] sm:$0xff]  ;;  %v1724_v54 = vrot.slane %v4891_v35, 1  ;;  %v5361_v19 = vld [vmem:[%s6183_s0 + $0x280] sm:$0x3] }
  0xc7   :  { %3326 = vmatpush3.xpose.msk.msra.mxu0 %vm73_vm0, %v4669_v44  ;;  %3360 = vmatpush3.xpose.msk.msra.mxu1 %vm73_vm0, %v4672_v50  ;;  %v833_v52 = vsel %vm823_vm2, %v6324_v40, %v832_v60  ;;  %v828_v30 = vsel %vm823_vm2, %v825_v6, %v827_v15  ;;  %v4903_v6 = vld [vmem:[%s6183_s0 + $0x278] sm:$0xff]  ;;  %6335 = vst [vmem:[#allocation7_spill] sm:$0xff] %v5361_v19  ;;  %v1723_v51 = vrot.slane %v4908_v42, 1  ;;  %v1718_v40 = vrot.slane %v4960_v14, 1 }
  0xc8   :  { %3327 = vmatprep.subr.msk.mxu0 %vm73_vm0, %v4677_v62  ;;  %3361 = vmatprep.subr.msk.mxu1 %vm73_vm0, %v4616_v24  ;;  %v4812_v31 = vsel %vm823_vm2, %v839_v18, %v840_v9  ;;  %v871_v9 = vsel %vm823_vm2, %v869_v57, %v870_v13  ;;  %v912_v18 = vrot.slane %v6327_v39, 2  ;;  %6329 = vst [vmem:[#allocation3_spill] sm:$0xff] %v4903_v6  ;;  %v5356_v13 = vld [vmem:[%s6183_s0 + $0x268] sm:$0x3]  ;;  %v1684_v60 = vrot.slane %v4903_v6, 1 }
  0xc9   :  { %v1681_v32 = vrot.slane %v5356_v13, 1  ;;  %v5413_v39 = vsel %vm426_vm1, %v1723_v51, %v1724_v54 }
  0xca   :  { %v913_v10 = vsel %vm823_vm2, %v910_v48, %v912_v18  ;;  %v4922_v48 = vld [vmem:[%s6184_s1 + $0x18] sm:$0xff]  ;;  %v1714_v18 = vrot.slane %v4978_v25, 1 }
  0xcb   :  { %3328 = vmatpush3.xpose.msk.msra.mxu0 %vm73_vm0, %v4693_v56  ;;  %3362 = vmatpush3.xpose.msk.msra.mxu1 %vm73_vm0, %v4631_v2 }
  0xcc   :  { %3329 = vmatprep.subr.msk.mxu0 %vm73_vm0, %v4697_v41  ;;  %3363 = vmatprep.subr.msk.mxu1 %vm73_vm0, %v4639_v38 }
  0xcf   :  { %3330 = vmatpush3.xpose.msk.msra.mxu0 %vm73_vm0, %v4710_v47  ;;  %3364 = vmatpush3.xpose.msk.msra.mxu1 %vm73_vm0, %v4669_v44 }
  0xd0   :  { %3331 = vmatprep.subr.msk.mxu0 %vm73_vm0, %v4715_v22  ;;  %3365 = vmatprep.subr.msk.mxu1 %vm73_vm0, %v4677_v62 }
  0xd3   :  { %3332 = vmatpush3.xpose.msk.msra.mxu0 %vm73_vm0, %v4727_v59  ;;  %3366 = vmatpush3.xpose.msk.msra.mxu1 %vm73_vm0, %v4693_v56 }
  0xd4   :  { %3333 = vmatprep.subr.msk.mxu0 %vm73_vm0, %v4731_v20  ;;  %3367 = vmatprep.subr.msk.mxu1 %vm73_vm0, %v4697_v41 }
  0xd7   :  { %3334 = vmatpush3.xpose.msk.msra.mxu0 %vm73_vm0, %v4744_v0  ;;  %3368 = vmatpush3.xpose.msk.msra.mxu1 %vm73_vm0, %v4710_v47 }
  0xd8   :  { %3335 = vmatprep.subr.msk.mxu0 %vm73_vm0, %v4749_v4  ;;  %3369 = vmatprep.subr.msk.mxu1 %vm73_vm0, %v4715_v22 }
  0xdb   :  { %3336 = vmatpush3.xpose.msk.msra.mxu0 %vm73_vm0, %v4761_v58  ;;  %3370 = vmatpush3.xpose.msk.msra.mxu1 %vm73_vm0, %v4727_v59 }
  0xdc   :  { %3337 = vmatprep.subr.msk.mxu0 %vm73_vm0, %v4765_v63  ;;  %3371 = vmatprep.subr.msk.mxu1 %vm73_vm0, %v4731_v20 }
  0xdf   :  { %3338 = vmatpush3.xpose.msk.msra.mxu0 %vm73_vm0, %v4778_v36  ;;  %3372 = vmatpush3.xpose.msk.msra.mxu1 %vm73_vm0, %v4744_v0 }
  0xe0   :  { %3339 = vmatprep.subr.msk.mxu0 %vm73_vm0, %v4783_v17  ;;  %3373 = vmatprep.subr.msk.mxu1 %vm73_vm0, %v4749_v4 }
  0xe3   :  { %3340 = vmatpush3.xpose.msk.msra.mxu0 %vm73_vm0, %v4795_v21  ;;  %3374 = vmatpush3.xpose.msk.msra.mxu1 %vm73_vm0, %v4761_v58 }
  0xe4   :  { %3341 = vmatprep.subr.msk.mxu0 %vm73_vm0, %v4799_v45  ;;  %3375 = vmatprep.subr.msk.mxu1 %vm73_vm0, %v4765_v63 }
  0xe7   :  { %3342 = vmatpush3.xpose.msk.msra.mxu0 %vm73_vm0, %v4812_v31  ;;  %3376 = vmatpush3.xpose.msk.msra.mxu1 %vm73_vm0, %v4778_v36 }
  0xe8   :  { %3343 = vmatprep.subr.msk.mxu0 %vm73_vm0, %v4817_v49  ;;  %3377 = vmatprep.subr.msk.mxu1 %vm73_vm0, %v4783_v17 }
  0xeb   :  { %3344 = vmatpush3.xpose.msk.msra.mxu0 %vm73_vm0, %v4829_v27  ;;  %3378 = vmatpush3.xpose.msk.msra.mxu1 %vm73_vm0, %v4795_v21 }
  0xec   :  { %3345 = vmatprep.subr.msk.mxu0 %vm73_vm0, %v4833_v8  ;;  %3379 = vmatprep.subr.msk.mxu1 %vm73_vm0, %v4799_v45 }
  0xef   :  { %3346 = vmatpush3.xpose.msk.msra.mxu0 %vm73_vm0, %v4846_v29  ;;  %3380 = vmatpush3.xpose.msk.msra.mxu1 %vm73_vm0, %v4812_v31 }
  0xf0   :  { %3347 = vmatprep.subr.msk.mxu0 %vm73_vm0, %v873_v61  ;;  %3381 = vmatprep.subr.msk.mxu1 %vm73_vm0, %v4817_v49 }
  0xf3   :  { %3348 = vmatpush3.xpose.msk.msra.mxu0 %vm73_vm0, %v833_v52  ;;  %3382 = vmatpush3.xpose.msk.msra.mxu1 %vm73_vm0, %v4829_v27 }
  0xf4   :  { %3349 = vmatprep.subr.msk.mxu0 %vm73_vm0, %v871_v9  ;;  %3383 = vmatprep.subr.msk.mxu1 %vm73_vm0, %v4833_v8 }
  0xf7   :  { %3350 = vmatpush3.xpose.msk.msra.mxu0 %vm73_vm0, %v6326_v33  ;;  %3384 = vmatpush3.xpose.msk.msra.mxu1 %vm73_vm0, %v4846_v29 }
  0xf8   :  { %3351 = vmatprep.subr.msk.mxu0 %vm73_vm0, %v4634_v3  ;;  %3385 = vmatprep.subr.msk.mxu1 %vm73_vm0, %v873_v61 }
  0xfb   :  { %3352 = vmatpush3.xpose.msk.msra.mxu0 %vm73_vm0, %v828_v30  ;;  %3386 = vmatpush3.xpose.msk.msra.mxu1 %vm73_vm0, %v833_v52  ;;  %v5391_v52 = vld [vmem:[%s6183_s0 + $0x310] sm:$0x3] }
  0xfc   :  { %3353 = vmatprep.subr.msk.mxu0 %vm73_vm0, %v4672_v50  ;;  %3387 = vmatprep.subr.msk.mxu1 %vm73_vm0, %v871_v9 }
  0xff   :  { %3354 = vmatpush3.xpose.msk.msra.mxu0 %vm73_vm0, %v4456_v16  ;;  %3388 = vmatpush3.xpose.msk.msra.mxu1 %vm73_vm0, %v6326_v33  ;;  %v4917_v16 = vld [vmem:[%s6184_s1 + $0x40] sm:$0xff] }
 0x100   :  { %3391 = vmatprep.subr.msk.mxu0 %vm73_vm0, %v913_v10  ;;  %3425 = vmatprep.subr.msk.mxu1 %vm73_vm0, %v4891_v35  ;;  %v1716_v10 = vrot.slane %v5391_v52, 1 }
 0x102   :  { %3356 = vmatmul.mubr.msk.f32.vlgmr.msra.gmra.mxu0 %vm73_vm0, %v4653_v7  ;;  %3390 = vmatmul.mubr.msk.f32.vlgmr.msra.gmra.mxu1 %vm73_vm0, %v4658_v37  ;;  %v4934_v7 = vld [vmem:[%s6183_s0 + $0x270] sm:$0xff]  ;;  %v4939_v37 = vld [vmem:[%s6183_s0 + $0x320] sm:$0xff] }
 0x103   :  { %3392 = vmatpush3.xpose.msk.msra.mxu0 %vm73_vm0, %v873_v61  ;;  %3426 = vmatpush3.xpose.msk.msra.mxu1 %vm73_vm0, %v4903_v6  ;;  %6330 = vst [vmem:[#allocation22_spill] sm:$0xff] %v4934_v7  ;;  %v1719_v1 = vrot.slane %v4939_v37, 1  ;;  %v1686_v61 = vrot.slane %v5361_v19, 1  ;;  %v1683_v33 = vrot.slane %v4934_v7, 1 }
 0x104   :  { %3393 = vmatprep.subr.msk.mxu0 %vm73_vm0, %v4497_v23  ;;  %3427 = vmatprep.subr.msk.mxu1 %vm73_vm0, %v4908_v42  ;;  %v4955_v23 = vld [vmem:[%s6183_s0 + $0x260] sm:$0xff] }
 0x105   :  { %3423 = vmatprep.mubr.msk.f32.mxu0 %vm73_vm0, %v4917_v16  ;;  %3457 = vmatprep.mubr.msk.f32.mxu1 %vm73_vm0, %v4922_v48  ;;  %v5405_v11 = vsel %vm426_vm1, %v1684_v60, %v1686_v61  ;;  %v5410_v30 = vsel %vm426_vm1, %v1718_v40, %v1719_v1 }
 0x107   :  { %3394 = vmatpush3.xpose.msk.msra.mxu0 %vm73_vm0, %v871_v9  ;;  %3428 = vmatpush3.xpose.msk.msra.mxu1 %vm73_vm0, %v4934_v7 }
 0x108   :  { %3395 = vmatprep.subr.msk.mxu0 %vm73_vm0, %v4619_v34  ;;  %3429 = vmatprep.subr.msk.mxu1 %vm73_vm0, %v4939_v37  ;;  %v4973_v34 = vld [vmem:[%s6183_s0 + $0x258] sm:$0xff] }
 0x109   :  { %v1678_v15 = vrot.slane %v4973_v34, 1 }
 0x10b   :  { %3396 = vmatpush3.xpose.msk.msra.mxu0 %vm73_vm0, %v4634_v3  ;;  %3430 = vmatpush3.xpose.msk.msra.mxu1 %vm73_vm0, %v4955_v23  ;;  %v4991_v3 = vld [vmem:[%s6183_s0 + $0x248] sm:$0xff] }
 0x10c   :  { %3397 = vmatprep.subr.msk.mxu0 %vm73_vm0, %v4642_v55  ;;  %3431 = vmatprep.subr.msk.mxu1 %vm73_vm0, %v4960_v14  ;;  %v4996_v55 = vld [vmem:[%s6183_s0 + $0x300] sm:$0xff] }
 0x10d   :  { %v1713_v61 = vrot.slane %v4996_v55, 1 }
 0x10f   :  { %3398 = vmatpush3.xpose.msk.msra.mxu0 %vm73_vm0, %v4672_v50  ;;  %3432 = vmatpush3.xpose.msk.msra.mxu1 %vm73_vm0, %v4973_v34  ;;  %v5014_v50 = vld [vmem:[%s6183_s0 + $0x2f0] sm:$0xff]  ;;  %v5480_v40 = vsel %vm426_vm1, %v1713_v61, %v1714_v18 }
 0x110   :  { %3399 = vmatprep.subr.msk.mxu0 %vm73_vm0, %v4616_v24  ;;  %3433 = vmatprep.subr.msk.mxu1 %vm73_vm0, %v4978_v25  ;;  %v5009_v24 = vld [vmem:[%s6183_s0 + $0x240] sm:$0xff]  ;;  %6340 = vst [vmem:[#allocation10_spill] sm:$0xff] %v5480_v40 }
 0x111   :  { %v1673_v51 = vrot.slane %v5009_v24, 1 }
 0x113   :  { %3400 = vmatpush3.xpose.msk.msra.mxu0 %vm73_vm0, %v4631_v2  ;;  %3434 = vmatpush3.xpose.msk.msra.mxu1 %vm73_vm0, %v4991_v3  ;;  %v5027_v2 = vld [vmem:[%s6183_s0 + $0x230] sm:$0xff] }
 0x114   :  { %3401 = vmatprep.subr.msk.mxu0 %vm73_vm0, %v4639_v38  ;;  %3435 = vmatprep.subr.msk.mxu1 %vm73_vm0, %v4996_v55  ;;  %v5032_v38 = vld [vmem:[%s6183_s0 + $0x2e8] sm:$0xff] }
 0x117   :  { %3402 = vmatpush3.xpose.msk.msra.mxu0 %vm73_vm0, %v4669_v44  ;;  %3436 = vmatpush3.xpose.msk.msra.mxu1 %vm73_vm0, %v5009_v24  ;;  %v5045_v44 = vld [vmem:[%s6183_s0 + $0x228] sm:$0xff] }
 0x118   :  { %3403 = vmatprep.subr.msk.mxu0 %vm73_vm0, %v4677_v62  ;;  %3437 = vmatprep.subr.msk.mxu1 %vm73_vm0, %v5014_v50  ;;  %v5050_v62 = vld [vmem:[%s6183_s0 + $0x2d8] sm:$0xff] }
 0x11b   :  { %3404 = vmatpush3.xpose.msk.msra.mxu0 %vm73_vm0, %v4693_v56  ;;  %3438 = vmatpush3.xpose.msk.msra.mxu1 %vm73_vm0, %v5027_v2  ;;  %v5063_v56 = vld [vmem:[%s6183_s0 + $0x218] sm:$0xff] }
 0x11c   :  { %3405 = vmatprep.subr.msk.mxu0 %vm73_vm0, %v4697_v41  ;;  %3439 = vmatprep.subr.msk.mxu1 %vm73_vm0, %v5032_v38  ;;  %v5068_v41 = vld [vmem:[%s6183_s0 + $0x2d0] sm:$0xff] }
 0x11d   :  { %6331 = vst [vmem:[#allocation4_spill] sm:$0xff] %v5068_v41 }
 0x11f   :  { %3406 = vmatpush3.xpose.msk.msra.mxu0 %vm73_vm0, %v4710_v47  ;;  %3440 = vmatpush3.xpose.msk.msra.mxu1 %vm73_vm0, %v5045_v44  ;;  %v5081_v47 = vld [vmem:[%s6183_s0 + $0x210] sm:$0xff] }
 0x120   :  { %3407 = vmatprep.subr.msk.mxu0 %vm73_vm0, %v4715_v22  ;;  %3441 = vmatprep.subr.msk.mxu1 %vm73_vm0, %v5050_v62  ;;  %v5086_v22 = vld [vmem:[%s6183_s0 + $0x2c0] sm:$0xff] }
 0x123   :  { %3408 = vmatpush3.xpose.msk.msra.mxu0 %vm73_vm0, %v4727_v59  ;;  %3442 = vmatpush3.xpose.msk.msra.mxu1 %vm73_vm0, %v5063_v56  ;;  %v5099_v59 = vld [vmem:[%s6183_s0 + $0x200] sm:$0xff] }
 0x124   :  { %3409 = vmatprep.subr.msk.mxu0 %vm73_vm0, %v4731_v20  ;;  %3443 = vmatprep.subr.msk.mxu1 %vm73_vm0, %v5068_v41  ;;  %v5104_v20 = vld [vmem:[%s6183_s0 + $0x2b8] sm:$0xff] }
 0x125   :  { %6332 = vst [vmem:[#allocation23_spill] sm:$0xff] %v5104_v20 }
 0x127   :  { %3410 = vmatpush3.xpose.msk.msra.mxu0 %vm73_vm0, %v4744_v0  ;;  %3444 = vmatpush3.xpose.msk.msra.mxu1 %vm73_vm0, %v5081_v47  ;;  %v5117_v0 = vld [vmem:[%s6183_s0 + $0x1f8] sm:$0xff] }
 0x128   :  { %3411 = vmatprep.subr.msk.mxu0 %vm73_vm0, %v4749_v4  ;;  %3445 = vmatprep.subr.msk.mxu1 %vm73_vm0, %v5086_v22  ;;  %v5122_v4 = vld [vmem:[%s6183_s0 + $0x2a8] sm:$0xff] }
 0x12b   :  { %3412 = vmatpush3.xpose.msk.msra.mxu0 %vm73_vm0, %v4761_v58  ;;  %3446 = vmatpush3.xpose.msk.msra.mxu1 %vm73_vm0, %v5099_v59  ;;  %v5135_v58 = vld [vmem:[%s6183_s0 + $0x1e8] sm:$0xff] }
 0x12c   :  { %3413 = vmatprep.subr.msk.mxu0 %vm73_vm0, %v4765_v63  ;;  %3447 = vmatprep.subr.msk.mxu1 %vm73_vm0, %v5104_v20  ;;  %v5140_v63 = vld [vmem:[%s6183_s0 + $0x2a0] sm:$0xff] }
 0x12d   :  { %6333 = vst [vmem:[#allocation5_spill] sm:$0xff] %v5140_v63 }
 0x12f   :  { %3414 = vmatpush3.xpose.msk.msra.mxu0 %vm73_vm0, %v4778_v36  ;;  %3448 = vmatpush3.xpose.msk.msra.mxu1 %vm73_vm0, %v5117_v0  ;;  %v5153_v36 = vld [vmem:[%s6183_s0 + $0x1e0] sm:$0xff] }
 0x130   :  { %3415 = vmatprep.subr.msk.mxu0 %vm73_vm0, %v4783_v17  ;;  %3449 = vmatprep.subr.msk.mxu1 %vm73_vm0, %v5122_v4  ;;  %v5158_v17 = vld [vmem:[%s6183_s0 + $0x290] sm:$0xff] }
 0x133   :  { %3416 = vmatpush3.xpose.msk.msra.mxu0 %vm73_vm0, %v4795_v21  ;;  %3450 = vmatpush3.xpose.msk.msra.mxu1 %vm73_vm0, %v5135_v58  ;;  %v5171_v21 = vld [vmem:[%s6183_s0 + $0x1d0] sm:$0xff] }
 0x134   :  { %3417 = vmatprep.subr.msk.mxu0 %vm73_vm0, %v4799_v45  ;;  %3451 = vmatprep.subr.msk.mxu1 %vm73_vm0, %v5140_v63  ;;  %v5176_v45 = vld [vmem:[%s6183_s0 + $0x288] sm:$0xff] }
 0x137   :  { %3418 = vmatpush3.xpose.msk.msra.mxu0 %vm73_vm0, %v4812_v31  ;;  %3452 = vmatpush3.xpose.msk.msra.mxu1 %vm73_vm0, %v5153_v36  ;;  %v5189_v31 = vld [vmem:[%s6183_s0 + $0x1c8] sm:$0xff] }
 0x138   :  { %3419 = vmatprep.subr.msk.mxu0 %vm73_vm0, %v4817_v49  ;;  %3453 = vmatprep.subr.msk.mxu1 %vm73_vm0, %v5158_v17  ;;  %v5334_v49 = vld [vmem:[%s6183_s0 + $0x340] sm:$0x3] }
 0x139   :  { %6334 = vst [vmem:[#allocation6_spill] sm:$0xff] %v5334_v49  ;;  %v1726_v28 = vrot.slane %v5334_v49, 1  ;;  %v1708_v49 = vrot.slane %v5032_v38, 1 }
 0x13b   :  { %3420 = vmatpush3.xpose.msk.msra.mxu0 %vm73_vm0, %v4829_v27  ;;  %3454 = vmatpush3.xpose.msk.msra.mxu1 %vm73_vm0, %v5171_v21  ;;  %v5348_v27 = vld [vmem:[%s6183_s0 + $0x1b8] sm:$0xff]  ;;  %v5385_v12 = vsel %vm426_vm1, %v1724_v54, %v1726_v28  ;;  %v5436_v54 = vld [vmem:[%s6184_s1 + $0x20] sm:$0xff] }
 0x13c   :  { %3421 = vmatprep.subr.msk.mxu0 %vm73_vm0, %v4833_v8  ;;  %3455 = vmatprep.subr.msk.mxu1 %vm73_vm0, %v5176_v45 }
 0x13f   :  { %3422 = vmatpush3.xpose.msk.msra.mxu0 %vm73_vm0, %v4846_v29  ;;  %3456 = vmatpush3.xpose.msk.msra.mxu1 %vm73_vm0, %v5189_v31  ;;  %v1679_v29 = vrot.slane %v4955_v23, 1 }
 0x140   :  { %3459 = vmatprep.subr.msk.mxu0 %vm73_vm0, %v4939_v37  ;;  %3493 = vmatprep.subr.msk.mxu1 %vm73_vm0, %v5194_v43 }
 0x141   :  { %v5402_v9 = vsel %vm426_vm1, %v1679_v29, %v1681_v32  ;;  %v5455_v32 = vsel %vm426_vm1, %v1714_v18, %v1716_v10  ;;  %v5487_v10 = vld [vmem:[%s6183_s0 + $0x238] sm:$0x3] }
 0x142   :  { %3424 = vmatmul.mubr.msk.f32.vlgmr.msra.gmra.mxu0 %vm73_vm0, %v4917_v16  ;;  %3458 = vmatmul.mubr.msk.f32.vlgmr.msra.gmra.mxu1 %vm73_vm0, %v4922_v48  ;;  %v3731_v16 = vld [vmem:[%s6184_s1 + $0x30] sm:$0xff]  ;;  %v5431_v48 = vld [vmem:[%s6184_s1 + $0x8] sm:$0xff]  ;;  %6338 = vst [vmem:[#allocation25_spill] sm:$0xff] %v5455_v32 }
 0x143   :  { %3460 = vmatpush3.xpose.msk.msra.mxu0 %vm73_vm0, %v4955_v23  ;;  %3494 = vmatpush3.xpose.msk.msra.mxu1 %vm73_vm0, %v5158_v17 }
 0x144   :  { %3461 = vmatprep.subr.msk.mxu0 %vm73_vm0, %v4960_v14  ;;  %3495 = vmatprep.subr.msk.mxu1 %vm73_vm0, %v5207_v26 }
 0x145   :  { %3491 = vmatprep.mubr.msk.f32.mxu0 %vm73_vm0, %v5216_v46  ;;  %3525 = vmatprep.mubr.msk.f32.mxu1 %vm73_vm0, %v4123_v53  ;;  %v5329_v53 = vld [vmem:[%s6183_s0 + $0x328] sm:$0x3] }
 0x146   :  { %v1721_v8 = vrot.slane %v5329_v53, 1 }
 0x147   :  { %3462 = vmatpush3.xpose.msk.msra.mxu0 %vm73_vm0, %v4973_v34  ;;  %3496 = vmatpush3.xpose.msk.msra.mxu1 %vm73_vm0, %v5176_v45 }
 0x148   :  { %3463 = vmatprep.subr.msk.mxu0 %vm73_vm0, %v4978_v25  ;;  %3497 = vmatprep.subr.msk.mxu1 %vm73_vm0, %v4891_v35  ;;  %v5382_v57 = vsel %vm426_vm1, %v1719_v1, %v1721_v8  ;;  %v5450_v1 = vsel %vm426_vm1, %v1683_v33, %v1684_v60  ;;  %v1674_v8 = vrot.slane %v4991_v3, 1  ;;  %v5509_v35 = vld [vmem:[%s6183_s0 + $0x2e0] sm:$0x3] }
 0x149   :  { %v1706_v19 = vrot.slane %v5509_v35, 1 }
 0x14a   :  { %v5498_v18 = vsel %vm426_vm1, %v1673_v51, %v1674_v8  ;;  %v1668_v51 = vrot.slane %v5045_v44, 1 }
 0x14b   :  { %3464 = vmatpush3.xpose.msk.msra.mxu0 %vm73_vm0, %v4991_v3  ;;  %3498 = vmatpush3.xpose.msk.msra.mxu1 %vm73_vm0, %v4903_v6  ;;  %6341 = vst [vmem:[#allocation11_spill] sm:$0xff] %v5498_v18 }
 0x14c   :  { %3465 = vmatprep.subr.msk.mxu0 %vm73_vm0, %v4996_v55  ;;  %3499 = vmatprep.subr.msk.mxu1 %vm73_vm0, %v4908_v42  ;;  %v5420_v42 = vld [vmem:[%s6183_s0 + $0x250] sm:$0x3] }
 0x14d   :  { %v1676_v28 = vrot.slane %v5420_v42, 1 }
 0x14f   :  { %3466 = vmatpush3.xpose.msk.msra.mxu0 %vm73_vm0, %v5009_v24  ;;  %3500 = vmatpush3.xpose.msk.msra.mxu1 %vm73_vm0, %v4934_v7  ;;  %v5476_v60 = vsel %vm426_vm1, %v1674_v8, %v1676_v28  ;;  %v1671_v28 = vrot.slane %v5487_v10, 1 }
 0x150   :  { %3467 = vmatprep.subr.msk.mxu0 %vm73_vm0, %v5014_v50  ;;  %3501 = vmatprep.subr.msk.mxu1 %vm73_vm0, %v4939_v37  ;;  %6339 = vst [vmem:[#allocation9_spill] sm:$0xff] %v5476_v60 }
 0x153   :  { %3468 = vmatpush3.xpose.msk.msra.mxu0 %vm73_vm0, %v5027_v2  ;;  %3502 = vmatpush3.xpose.msk.msra.mxu1 %vm73_vm0, %v4955_v23 }
 0x154   :  { %3469 = vmatprep.subr.msk.mxu0 %vm73_vm0, %v5032_v38  ;;  %3503 = vmatprep.subr.msk.mxu1 %vm73_vm0, %v4960_v14 }
 0x157   :  { %3470 = vmatpush3.xpose.msk.msra.mxu0 %vm73_vm0, %v5045_v44  ;;  %3504 = vmatpush3.xpose.msk.msra.mxu1 %vm73_vm0, %v4973_v34 }
 0x158   :  { %3471 = vmatprep.subr.msk.mxu0 %vm73_vm0, %v5050_v62  ;;  %3505 = vmatprep.subr.msk.mxu1 %vm73_vm0, %v4978_v25 }
 0x15b   :  { %3472 = vmatpush3.xpose.msk.msra.mxu0 %vm73_vm0, %v5063_v56  ;;  %3506 = vmatpush3.xpose.msk.msra.mxu1 %vm73_vm0, %v4991_v3 }
 0x15c   :  { %3473 = vmatprep.subr.msk.mxu0 %vm73_vm0, %v5068_v41  ;;  %3507 = vmatprep.subr.msk.mxu1 %vm73_vm0, %v4996_v55 }
 0x15f   :  { %3474 = vmatpush3.xpose.msk.msra.mxu0 %vm73_vm0, %v5081_v47  ;;  %3508 = vmatpush3.xpose.msk.msra.mxu1 %vm73_vm0, %v5009_v24 }
 0x160   :  { %3475 = vmatprep.subr.msk.mxu0 %vm73_vm0, %v5086_v22  ;;  %3509 = vmatprep.subr.msk.mxu1 %vm73_vm0, %v5014_v50 }
 0x163   :  { %3476 = vmatpush3.xpose.msk.msra.mxu0 %vm73_vm0, %v5099_v59  ;;  %3510 = vmatpush3.xpose.msk.msra.mxu1 %vm73_vm0, %v5027_v2 }
 0x164   :  { %3477 = vmatprep.subr.msk.mxu0 %vm73_vm0, %v5104_v20  ;;  %3511 = vmatprep.subr.msk.mxu1 %vm73_vm0, %v5032_v38 }
 0x167   :  { %3478 = vmatpush3.xpose.msk.msra.mxu0 %vm73_vm0, %v5117_v0  ;;  %3512 = vmatpush3.xpose.msk.msra.mxu1 %vm73_vm0, %v5045_v44 }
 0x168   :  { %3479 = vmatprep.subr.msk.mxu0 %vm73_vm0, %v5122_v4  ;;  %3513 = vmatprep.subr.msk.mxu1 %vm73_vm0, %v5050_v62 }
 0x16b   :  { %3480 = vmatpush3.xpose.msk.msra.mxu0 %vm73_vm0, %v5135_v58  ;;  %3514 = vmatpush3.xpose.msk.msra.mxu1 %vm73_vm0, %v5063_v56 }
 0x16c   :  { %3481 = vmatprep.subr.msk.mxu0 %vm73_vm0, %v5140_v63  ;;  %3515 = vmatprep.subr.msk.mxu1 %vm73_vm0, %v5068_v41 }
 0x16f   :  { %3482 = vmatpush3.xpose.msk.msra.mxu0 %vm73_vm0, %v5153_v36  ;;  %3516 = vmatpush3.xpose.msk.msra.mxu1 %vm73_vm0, %v5081_v47 }
 0x170   :  { %3483 = vmatprep.subr.msk.mxu0 %vm73_vm0, %v5158_v17  ;;  %3517 = vmatprep.subr.msk.mxu1 %vm73_vm0, %v5086_v22 }
 0x173   :  { %3484 = vmatpush3.xpose.msk.msra.mxu0 %vm73_vm0, %v5171_v21  ;;  %3518 = vmatpush3.xpose.msk.msra.mxu1 %vm73_vm0, %v5099_v59 }
 0x174   :  { %3485 = vmatprep.subr.msk.mxu0 %vm73_vm0, %v5176_v45  ;;  %3519 = vmatprep.subr.msk.mxu1 %vm73_vm0, %v5104_v20 }
 0x177   :  { %3486 = vmatpush3.xpose.msk.msra.mxu0 %vm73_vm0, %v5189_v31  ;;  %3520 = vmatpush3.xpose.msk.msra.mxu1 %vm73_vm0, %v5117_v0 }
 0x178   :  { %3487 = vmatprep.subr.msk.mxu0 %vm73_vm0, %v4903_v6  ;;  %3521 = vmatprep.subr.msk.mxu1 %vm73_vm0, %v5122_v4  ;;  %v5531_v6 = vld [vmem:[%s6183_s0 + $0x220] sm:$0x3] }
 0x17b   :  { %3488 = vmatpush3.xpose.msk.msra.mxu0 %vm73_vm0, %v5348_v27  ;;  %3522 = vmatpush3.xpose.msk.msra.mxu1 %vm73_vm0, %v5135_v58 }
 0x17c   :  { %3489 = vmatprep.subr.msk.mxu0 %vm73_vm0, %v4934_v7  ;;  %3523 = vmatprep.subr.msk.mxu1 %vm73_vm0, %v5140_v63  ;;  %v1704_v7 = vrot.slane %v5050_v62, 1 }
 0x17f   :  { %3490 = vmatpush3.xpose.msk.msra.mxu0 %vm73_vm0, %v5374_v5  ;;  %3524 = vmatpush3.xpose.msk.msra.mxu1 %vm73_vm0, %v5153_v36 }
 0x180   :  { %3527 = vmatprep.subr.msk.mxu0 %vm73_vm0, %v5382_v57  ;;  %3561 = vmatprep.subr.msk.mxu1 %vm73_vm0, %v5385_v12 }
 0x182   :  { %3492 = vmatmul.mubr.msk.f32.vlgmr.msra.gmra.mxu0 %vm73_vm0, %v5216_v46  ;;  %3526 = vmatmul.mubr.msk.f32.vlgmr.msra.gmra.mxu1 %vm73_vm0, %v3731_v16  ;;  %v5447_v46 = vsel %vm426_vm1, %v1678_v15, %v1679_v29  ;;  %v5465_v29 = vld [vmem:[%s6183_s0 + $0x2f8] sm:$0x3]  ;;  %v1709_v15 = vrot.slane %v5014_v50, 1  ;;  %v1669_v16 = vrot.slane %v5027_v2, 1 }
 0x183   :  { %3528 = vmatpush3.xpose.msk.msra.mxu0 %vm73_vm0, %v5402_v9  ;;  %3562 = vmatpush3.xpose.msk.msra.mxu1 %vm73_vm0, %v5405_v11  ;;  %6337 = vst [vmem:[#allocation8_spill] sm:$0xff] %v5447_v46  ;;  %v1711_v33 = vrot.slane %v5465_v29, 1 }
 0x184   :  { %3529 = vmatprep.subr.msk.mxu0 %vm73_vm0, %v5410_v30  ;;  %3563 = vmatprep.subr.msk.mxu1 %vm73_vm0, %v5413_v39  ;;  %v5520_v8 = vsel %vm426_vm1, %v1669_v16, %v1671_v28  ;;  %v1666_v28 = vrot.slane %v5531_v6, 1 }
 0x185   :  { %3559 = vmatprep.mubr.msk.f32.mxu0 %vm73_vm0, %v5431_v48  ;;  %3593 = vmatprep.mubr.msk.f32.mxu1 %vm73_vm0, %v5436_v54  ;;  %v5503_v61 = vsel %vm426_vm1, %v1709_v15, %v1711_v33  ;;  %6343 = vst [vmem:[#allocation12_spill] sm:$0xff] %v5520_v8  ;;  %v5524_v33 = vsel %vm426_vm1, %v1708_v49, %v1709_v15  ;;  %v1664_v15 = vrot.slane %v5063_v56, 1 }
 0x186   :  { %6342 = vst [vmem:[#allocation26_spill] sm:$0xff] %v5503_v61  ;;  %6344 = vst [vmem:[#allocation27_spill] sm:$0xff] %v5524_v33  ;;  %v5542_v49 = vsel %vm426_vm1, %v1668_v51, %v1669_v16  ;;  %v1663_v16 = vrot.slane %v5081_v47, 1 }
 0x187   :  { %3530 = vmatpush3.xpose.msk.msra.mxu0 %vm73_vm0, %v5447_v46  ;;  %3564 = vmatpush3.xpose.msk.msra.mxu1 %vm73_vm0, %v5450_v1  ;;  %6345 = vst [vmem:[#allocation13_spill] sm:$0xff] %v5542_v49 }
 0x188   :  { %3531 = vmatprep.subr.msk.mxu0 %vm73_vm0, %v5455_v32  ;;  %3565 = vmatprep.subr.msk.mxu1 %vm73_vm0, %v5382_v57 }
 0x18b   :  { %3532 = vmatpush3.xpose.msk.msra.mxu0 %vm73_vm0, %v5476_v60  ;;  %3566 = vmatpush3.xpose.msk.msra.mxu1 %vm73_vm0, %v5402_v9 }
 0x18c   :  { %3533 = vmatprep.subr.msk.mxu0 %vm73_vm0, %v5480_v40  ;;  %3567 = vmatprep.subr.msk.mxu1 %vm73_vm0, %v5410_v30 }
 0x18f   :  { %3534 = vmatpush3.xpose.msk.msra.mxu0 %vm73_vm0, %v5498_v18  ;;  %3568 = vmatpush3.xpose.msk.msra.mxu1 %vm73_vm0, %v5447_v46  ;;  %v1703_v46 = vrot.slane %v5068_v41, 1 }
 0x190   :  { %3535 = vmatprep.subr.msk.mxu0 %vm73_vm0, %v5503_v61  ;;  %3569 = vmatprep.subr.msk.mxu1 %vm73_vm0, %v5455_v32  ;;  %v5547_v32 = vsel %vm426_vm1, %v1704_v7, %v1706_v19  ;;  %v5564_v19 = vsel %vm426_vm1, %v1664_v15, %v1666_v28 }
 0x191   :  { %6346 = vst [vmem:[#allocation14_spill] sm:$0xff] %v5547_v32  ;;  %6348 = vst [vmem:[#allocation28_spill] sm:$0xff] %v5564_v19  ;;  %v5568_v51 = vsel %vm426_vm1, %v1703_v46, %v1704_v7  ;;  %v5586_v7 = vsel %vm426_vm1, %v1663_v16, %v1664_v15  ;;  %v1659_v46 = vrot.slane %v5099_v59, 1  ;;  %v1658_v15 = vrot.slane %v5117_v0, 1 }
 0x192   :  { %6349 = vst [vmem:[#allocation16_spill] sm:$0xff] %v5568_v51  ;;  %6350 = vst [vmem:[#allocation29_spill] sm:$0xff] %v5586_v7 }
 0x193   :  { %3536 = vmatpush3.xpose.msk.msra.mxu0 %vm73_vm0, %v5520_v8  ;;  %3570 = vmatpush3.xpose.msk.msra.mxu1 %vm73_vm0, %v5476_v60  ;;  %v5553_v60 = vld [vmem:[%s6183_s0 + $0x2c8] sm:$0x3] }
 0x194   :  { %3537 = vmatprep.subr.msk.mxu0 %vm73_vm0, %v5524_v33  ;;  %3571 = vmatprep.subr.msk.mxu1 %vm73_vm0, %v5480_v40  ;;  %6347 = vst [vmem:[#allocation15_spill] sm:$0xff] %v5553_v60  ;;  %v1699_v40 = vrot.slane %v5086_v22, 1  ;;  %v1701_v41 = vrot.slane %v5553_v60, 1  ;;  %v1698_v60 = vrot.slane %v5104_v20, 1 }
 0x196   :  { %v5612_v16 = vsel %vm426_vm1, %v1698_v60, %v1699_v40  ;;  %v5630_v60 = vsel %vm426_vm1, %v1658_v15, %v1659_v46 }
 0x197   :  { %3538 = vmatpush3.xpose.msk.msra.mxu0 %vm73_vm0, %v5542_v49  ;;  %3572 = vmatpush3.xpose.msk.msra.mxu1 %vm73_vm0, %v5498_v18  ;;  %v5575_v18 = vld [vmem:[%s6183_s0 + $0x208] sm:$0x3]  ;;  %6354 = vst [vmem:[#allocation31_spill] sm:$0xff] %v5630_v60 }
 0x198   :  { %3539 = vmatprep.subr.msk.mxu0 %vm73_vm0, %v5547_v32  ;;  %3573 = vmatprep.subr.msk.mxu1 %vm73_vm0, %v5503_v61  ;;  %v1661_v28 = vrot.slane %v5575_v18, 1  ;;  %v5591_v61 = vsel %vm426_vm1, %v1699_v40, %v1701_v41  ;;  %v1654_v40 = vrot.slane %v5135_v58, 1 }
 0x199   :  { %6351 = vst [vmem:[#allocation17_spill] sm:$0xff] %v5591_v61 }
 0x19a   :  { %v5608_v41 = vsel %vm426_vm1, %v1659_v46, %v1661_v28  ;;  %v1653_v46 = vrot.slane %v5153_v36, 1 }
 0x19b   :  { %3540 = vmatpush3.xpose.msk.msra.mxu0 %vm73_vm0, %v5564_v19  ;;  %3574 = vmatpush3.xpose.msk.msra.mxu1 %vm73_vm0, %v5520_v8  ;;  %v5597_v8 = vld [vmem:[%s6183_s0 + $0x2b0] sm:$0x3]  ;;  %6353 = vst [vmem:[#allocation30_spill] sm:$0xff] %v5608_v41 }
 0x19c   :  { %3541 = vmatprep.subr.msk.mxu0 %vm73_vm0, %v5568_v51  ;;  %3575 = vmatprep.subr.msk.mxu1 %vm73_vm0, %v5524_v33  ;;  %6352 = vst [vmem:[#allocation18_spill] sm:$0xff] %v5597_v8  ;;  %v1694_v33 = vrot.slane %v5122_v4, 1  ;;  %v1696_v20 = vrot.slane %v5597_v8, 1  ;;  %v1693_v8 = vrot.slane %v5140_v63, 1 }
 0x19e   :  { %v5656_v15 = vsel %vm426_vm1, %v1693_v8, %v1694_v33  ;;  %v5675_v8 = vsel %vm426_vm1, %v1653_v46, %v1654_v40 }
 0x19f   :  { %3542 = vmatpush3.xpose.msk.msra.mxu0 %vm73_vm0, %v5586_v7  ;;  %3576 = vmatpush3.xpose.msk.msra.mxu1 %vm73_vm0, %v5542_v49  ;;  %v5619_v49 = vld [vmem:[%s6183_s0 + $0x1f0] sm:$0x3]  ;;  %6358 = vst [vmem:[#allocation21_spill] sm:$0xff] %v5656_v15  ;;  %6359 = vst [vmem:[#allocation20_spill] sm:$0xff] %v5675_v8 }
 0x1a0   :  { %3543 = vmatprep.subr.msk.mxu0 %vm73_vm0, %v5591_v61  ;;  %3577 = vmatprep.subr.msk.mxu1 %vm73_vm0, %v5547_v32  ;;  %v1656_v28 = vrot.slane %v5619_v49, 1  ;;  %v5635_v32 = vsel %vm426_vm1, %v1694_v33, %v1696_v20 }
 0x1a1   :  { %6355 = vst [vmem:[#allocation19_spill] sm:$0xff] %v5635_v32 }
 0x1a2   :  { %v5652_v20 = vsel %vm426_vm1, %v1654_v40, %v1656_v28  ;;  %v1649_v28 = vrot.slane %v5171_v21, 1 }
 0x1a3   :  { %3544 = vmatpush3.xpose.msk.msra.mxu0 %vm73_vm0, %v5608_v41  ;;  %3578 = vmatpush3.xpose.msk.msra.mxu1 %vm73_vm0, %v5564_v19  ;;  %v5641_v19 = vld [vmem:[%s6183_s0 + $0x298] sm:$0x3]  ;;  %6357 = vst [vmem:[#allocation33_spill] sm:$0xff] %v5652_v20 }
 0x1a4   :  { %3545 = vmatprep.subr.msk.mxu0 %vm73_vm0, %v5612_v16  ;;  %3579 = vmatprep.subr.msk.mxu1 %vm73_vm0, %v5568_v51  ;;  %6356 = vst [vmem:[#allocation32_spill] sm:$0xff] %v5641_v19  ;;  %v1689_v51 = vrot.slane %v5158_v17, 1  ;;  %v1691_v63 = vrot.slane %v5641_v19, 1  ;;  %v1688_v19 = vrot.slane %v5176_v45, 1 }
 0x1a6   :  { %v1690_v46 = vsel %vm426_vm1, %v1688_v19, %v1689_v51 }
 0x1a7   :  { %3546 = vmatpush3.xpose.msk.msra.mxu0 %vm73_vm0, %v5630_v60  ;;  %3580 = vmatpush3.xpose.msk.msra.mxu1 %vm73_vm0, %v5586_v7  ;;  %v5663_v7 = vld [vmem:[%s6183_s0 + $0x1d8] sm:$0x3] }
 0x1a8   :  { %3547 = vmatprep.subr.msk.mxu0 %vm73_vm0, %v5635_v32  ;;  %3581 = vmatprep.subr.msk.mxu1 %vm73_vm0, %v5591_v61  ;;  %v1651_v33 = vrot.slane %v5663_v7, 1  ;;  %v1692_v61 = vsel %vm426_vm1, %v1689_v51, %v1691_v63  ;;  %v5693_v63 = vld [vmem:[%s6183_s0 + $0x1c0] sm:$0x3]  ;;  %v5707_v51 = vld [vmem:[%s6183_s0 + $0x358] sm:$0x3] }
 0x1a9   :  { %6360 = vst [vmem:[#allocation34_spill] sm:$0xff] %v5693_v63  ;;  %v1646_v19 = vrot.slane %v5693_v63, 1  ;;  %6361 = vst [vmem:[#allocation35_spill] sm:$0xff] %v5707_v51  ;;  %v2114_v63 = vrot.slane %v5329_v53, 2 }
 0x1aa   :  { %v1652_v40 = vsel %vm426_vm1, %v1649_v28, %v1651_v33 }
 0x1ab   :  { %3548 = vmatpush3.xpose.msk.msra.mxu0 %vm73_vm0, %v5652_v20  ;;  %3582 = vmatpush3.xpose.msk.msra.mxu1 %vm73_vm0, %v5608_v41  ;;  %v1648_v41 = vrot.slane %v5189_v31, 1 }
 0x1ac   :  { %3549 = vmatprep.subr.msk.mxu0 %vm73_vm0, %v5656_v15  ;;  %3583 = vmatprep.subr.msk.mxu1 %vm73_vm0, %v5612_v16 }
 0x1ad   :  { %v1650_v33 = vsel %vm426_vm1, %v1648_v41, %v1649_v28  ;;  %v1729_v28 = vrot.slane %v5194_v43, 1 }
 0x1af   :  { %3550 = vmatpush3.xpose.msk.msra.mxu0 %vm73_vm0, %v5675_v8  ;;  %3584 = vmatpush3.xpose.msk.msra.mxu1 %vm73_vm0, %v5630_v60  ;;  %v1644_v60 = vrot.slane %v5348_v27, 1 }
 0x1b0   :  { %3551 = vmatprep.subr.msk.mxu0 %vm73_vm0, %v1692_v61  ;;  %3585 = vmatprep.subr.msk.mxu1 %vm73_vm0, %v5635_v32  ;;  %v2112_v32 = vrot.slane %v4939_v37, 2 }
 0x1b1   :  { %v1647_v41 = vsel %vm426_vm1, %v1644_v60, %v1646_v19  ;;  %v2072_v19 = vrot.slane %v4955_v23, 2 }
 0x1b2   :  { %v5732_v53 = vsel %vm823_vm2, %v2112_v32, %v2114_v63  ;;  %v6363_v63 = vld [vmem:[#allocation8_spill] sm:$0xff] }
 0x1b3   :  { %3552 = vmatpush3.xpose.msk.msra.mxu0 %vm73_vm0, %v1652_v40  ;;  %3586 = vmatpush3.xpose.msk.msra.mxu1 %vm73_vm0, %v5652_v20  ;;  %v1643_v20 = vrot.slane %v5374_v5, 1  ;;  %v2074_v5 = vrot.slane %v5356_v13, 2  ;;  %v2071_v13 = vrot.slane %v4973_v34, 2  ;;  %v5762_v34 = vld [vmem:[%s6184_s1 + $0x10] sm:$0xff] }
 0x1b4   :  { %3553 = vmatprep.subr.msk.mxu0 %vm73_vm0, %v1690_v46  ;;  %3587 = vmatprep.subr.msk.mxu1 %vm73_vm0, %v5656_v15  ;;  %v1731_v15 = vrot.slane %v5707_v51, 1  ;;  %v1728_v51 = vrot.slane %v5207_v26, 1 }
 0x1b5   :  { %v5741_v23 = vsel %vm823_vm2, %v2072_v19, %v2074_v5  ;;  %v5757_v5 = vld [vmem:[%s6184_s1 + $0x38] sm:$0xff] }
 0x1b6   :  { %v1732_v37 = vsel %vm426_vm1, %v1729_v28, %v1731_v15  ;;  %v2109_v15 = vrot.slane %v5391_v52, 2  ;;  %v2067_v52 = vrot.slane %v4991_v3, 2 }
 0x1b7   :  { %3554 = vmatpush3.xpose.msk.msra.mxu0 %vm73_vm0, %v1650_v33  ;;  %3588 = vmatpush3.xpose.msk.msra.mxu1 %vm73_vm0, %v5675_v8  ;;  %v1645_v8 = vsel %vm426_vm1, %v1643_v20, %v1644_v60  ;;  %v1730_v60 = vsel %vm426_vm1, %v1728_v51, %v1729_v28  ;;  %v2092_v51 = vrot.slane %v5086_v22, 2  ;;  %v2054_v22 = vrot.slane %v5575_v18, 2 }
 0x1b8   :  { %3555 = vmatprep.subr.msk.mxu0 %vm73_vm0, %v5405_v11  ;;  %3589 = vmatprep.subr.msk.mxu1 %vm73_vm0, %v1692_v61  ;;  %v2051_v18 = vrot.slane %v5117_v0, 2 }
 0x1bb   :  { %3556 = vmatpush3.xpose.msk.msra.mxu0 %vm73_vm0, %v1647_v41  ;;  %3590 = vmatpush3.xpose.msk.msra.mxu1 %vm73_vm0, %v1652_v40  ;;  %v2111_v40 = vrot.slane %v4960_v14, 2  ;;  %v2107_v14 = vrot.slane %v4978_v25, 2  ;;  %v5771_v25 = vsel %vm823_vm2, %v2071_v13, %v2072_v19  ;;  %v6365_v41 = vld [vmem:[#allocation15_spill] sm:$0xff]  ;;  %v6366_v19 = vld [vmem:[#allocation9_spill] sm:$0xff] }
 0x1bc   :  { %3557 = vmatprep.subr.msk.mxu0 %vm73_vm0, %v5450_v1  ;;  %3591 = vmatprep.subr.msk.mxu1 %vm73_vm0, %v1690_v46  ;;  %v2094_v28 = vrot.slane %v6365_v41, 2  ;;  %v6378_v41 = vld [vmem:[#allocation28_spill] sm:$0xff] }
 0x1bd   :  { %v5746_v20 = vsel %vm823_vm2, %v2111_v40, %v2112_v32  ;;  %v2106_v32 = vrot.slane %v4996_v55, 2  ;;  %v2066_v55 = vrot.slane %v5009_v24, 2  ;;  %v2052_v40 = vrot.slane %v5099_v59, 2 }
 0x1be   :  { %v5881_v13 = vsel %vm823_vm2, %v2092_v51, %v2094_v28  ;;  %v2042_v28 = vrot.slane %v5171_v21, 2  ;;  %v6380_v21 = vld [vmem:[#allocation29_spill] sm:$0xff] }
 0x1bf   :  { %3558 = vmatpush3.xpose.msk.msra.mxu0 %vm73_vm0, %v1645_v8  ;;  %3592 = vmatpush3.xpose.msk.msra.mxu1 %vm73_vm0, %v1650_v33  ;;  %v2104_v8 = vrot.slane %v5465_v29, 2  ;;  %v5808_v24 = vsel %vm823_vm2, %v2066_v55, %v2067_v52  ;;  %v5893_v59 = vsel %vm823_vm2, %v2052_v40, %v2054_v22  ;;  %v6371_v55 = vld [vmem:[#allocation18_spill] sm:$0xff]  ;;  %v5910_v0 = vsel %vm823_vm2, %v2051_v18, %v2052_v40 }
 0x1c0   :  { %3595 = vmatprep.subr.msk.mxu0 %vm73_vm0, %v1732_v37  ;;  %3629 = vmatprep.subr.msk.mxu1 %vm73_vm0, %v5732_v53  ;;  %v6367_v37 = vld [vmem:[#allocation10_spill] sm:$0xff] }
 0x1c2   :  { %3560 = vmatmul.mubr.msk.f32.vlgmr.msra.gmra.mxu0 %vm73_vm0, %v5431_v48  ;;  %3594 = vmatmul.mubr.msk.f32.vlgmr.msra.gmra.mxu1 %vm73_vm0, %v5436_v54  ;;  %v2069_v48 = vrot.slane %v5420_v42, 2  ;;  %v5776_v54 = vsel %vm823_vm2, %v2107_v14, %v2109_v15  ;;  %v5795_v42 = vsel %vm823_vm2, %v2106_v32, %v2107_v14  ;;  %v6369_v15 = vld [vmem:[#allocation11_spill] sm:$0xff]  ;;  %v2087_v32 = vrot.slane %v5122_v4, 2 }
 0x1c3   :  { %3596 = vmatpush3.xpose.msk.msra.mxu0 %vm73_vm0, %v1692_v61  ;;  %3630 = vmatpush3.xpose.msk.msra.mxu1 %vm73_vm0, %v5741_v23  ;;  %v2102_v61 = vrot.slane %v5014_v50, 2  ;;  %v2064_v50 = vrot.slane %v5487_v10, 2  ;;  %v2049_v4 = vrot.slane %v5619_v49, 2  ;;  %v2046_v49 = vrot.slane %v5153_v36, 2 }
 0x1c4   :  { %3597 = vmatprep.subr.msk.mxu0 %vm73_vm0, %v1730_v60  ;;  %3631 = vmatprep.subr.msk.mxu1 %vm73_vm0, %v5746_v20  ;;  %v5791_v3 = vsel %vm823_vm2, %v2067_v52, %v2069_v48  ;;  %v6368_v60 = vld [vmem:[#allocation23_spill] sm:$0xff]  ;;  %v6370_v52 = vld [vmem:[#allocation26_spill] sm:$0xff] }
 0x1c5   :  { %3627 = vmatprep.mubr.msk.f32.mxu0 %vm73_vm0, %v5757_v5  ;;  %3661 = vmatprep.mubr.msk.f32.mxu1 %vm73_vm0, %v5762_v34  ;;  %v5813_v29 = vsel %vm823_vm2, %v2102_v61, %v2104_v8  ;;  %v2091_v14 = vrot.slane %v6368_v60, 2  ;;  %v6372_v8 = vld [vmem:[#allocation12_spill] sm:$0xff]  ;;  %v2081_v60 = vrot.slane %v5176_v45, 2 }
 0x1c7   :  { %3598 = vmatpush3.xpose.msk.msra.mxu0 %vm73_vm0, %v1690_v46  ;;  %3632 = vmatpush3.xpose.msk.msra.mxu1 %vm73_vm0, %v5771_v25  ;;  %v5897_v48 = vsel %vm823_vm2, %v2091_v14, %v2092_v51 }
 0x1c8   :  { %3599 = vmatprep.subr.msk.mxu0 %vm73_vm0, %v5385_v12  ;;  %3633 = vmatprep.subr.msk.mxu1 %vm73_vm0, %v5776_v54  ;;  %v2062_v12 = vrot.slane %v5027_v2, 2 }
 0x1ca   :  { %v5825_v2 = vsel %vm823_vm2, %v2062_v12, %v2064_v50  ;;  %v2047_v50 = vrot.slane %v5135_v58, 2 }
 0x1cb   :  { %3600 = vmatpush3.xpose.msk.msra.mxu0 %vm73_vm0, %v5405_v11  ;;  %3634 = vmatpush3.xpose.msk.msra.mxu1 %vm73_vm0, %v5791_v3  ;;  %v2101_v11 = vrot.slane %v5032_v38, 2  ;;  %v2097_v38 = vrot.slane %v5050_v62, 2  ;;  %v2059_v62 = vrot.slane %v5531_v6, 2  ;;  %v2056_v6 = vrot.slane %v5081_v47, 2 }
 0x1cc   :  { %3601 = vmatprep.subr.msk.mxu0 %vm73_vm0, %v5413_v39  ;;  %3635 = vmatprep.subr.msk.mxu1 %vm73_vm0, %v5795_v42  ;;  %v2061_v39 = vrot.slane %v5045_v44, 2  ;;  %v5927_v58 = vsel %vm823_vm2, %v2047_v50, %v2049_v4  ;;  %v5945_v36 = vsel %vm823_vm2, %v2046_v49, %v2047_v50  ;;  %v6383_v50 = vld [vmem:[#allocation7_spill] sm:$0xff]  ;;  %v6385_v49 = vld [vmem:[#allocation34_spill] sm:$0xff] }
 0x1cd   :  { %v5829_v10 = vsel %vm823_vm2, %v2101_v11, %v2102_v61  ;;  %v2089_v61 = vrot.slane %v6371_v55, 2  ;;  %v6381_v55 = vld [vmem:[#allocation17_spill] sm:$0xff]  ;;  %v2079_v4 = vrot.slane %v6383_v50, 2 }
 0x1ce   :  { %v5842_v44 = vsel %vm823_vm2, %v2061_v39, %v2062_v12  ;;  %v6373_v12 = vld [vmem:[#allocation27_spill] sm:$0xff]  ;;  %v6374_v39 = vld [vmem:[#allocation5_spill] sm:$0xff] }
 0x1cf   :  { %3602 = vmatpush3.xpose.msk.msra.mxu0 %vm73_vm0, %v5450_v1  ;;  %3636 = vmatpush3.xpose.msk.msra.mxu1 %vm73_vm0, %v5808_v24  ;;  %v2099_v1 = vrot.slane %v5509_v35, 2  ;;  %v5915_v11 = vsel %vm823_vm2, %v2087_v32, %v2089_v61 }
 0x1d0   :  { %3603 = vmatprep.subr.msk.mxu0 %vm73_vm0, %v5382_v57  ;;  %3637 = vmatprep.subr.msk.mxu1 %vm73_vm0, %v5813_v29  ;;  %v2057_v57 = vrot.slane %v5063_v56, 2 }
 0x1d1   :  { %v5847_v35 = vsel %vm823_vm2, %v2097_v38, %v2099_v1  ;;  %v239_v1 = vpop.f32.mrf.mxu0 }
 0x1d2   :  { %v5859_v56 = vsel %vm823_vm2, %v2057_v57, %v2059_v62  ;;  %v5876_v47 = vsel %vm823_vm2, %v2056_v6, %v2057_v57  ;;  %v6375_v57 = vld [vmem:[#allocation13_spill] sm:$0xff]  ;;  %v6376_v62 = vld [vmem:[#allocation14_spill] sm:$0xff] }
 0x1d3   :  { %3604 = vmatpush3.xpose.msk.msra.mxu0 %vm73_vm0, %v5402_v9  ;;  %3638 = vmatpush3.xpose.msk.msra.mxu1 %vm73_vm0, %v5825_v2  ;;  %v6362_v9 = vld [vmem:[#allocation4_spill] sm:$0xff]  ;;  %v241_v51 = vpop.f32.mrf.mxu0 }
 0x1d4   :  { %3605 = vmatprep.subr.msk.mxu0 %vm73_vm0, %v5410_v30  ;;  %3639 = vmatprep.subr.msk.mxu1 %vm73_vm0, %v5829_v10  ;;  %v2096_v46 = vrot.slane %v6362_v9, 2  ;;  %v6364_v30 = vld [vmem:[#allocation25_spill] sm:$0xff]  ;;  %v319_v9 = vpop.f32.mrf.mxu1 }
 0x1d5   :  { %v320_v14 = vadd.f32 %v319_v9, %v239_v1  ;;  %v2039_v9 = vrot.slane %v6385_v49, 2 }
 0x1d6   :  { %v5863_v33 = vsel %vm823_vm2, %v2096_v46, %v2097_v38  ;;  %v2086_v38 = vrot.slane %v6374_v39, 2  ;;  %v321_v40 = vpop.f32.mrf.mxu1 }
 0x1d7   :  { %3606 = vmatpush3.xpose.msk.msra.mxu0 %vm73_vm0, %v6363_v63  ;;  %3640 = vmatpush3.xpose.msk.msra.mxu1 %vm73_vm0, %v5842_v44  ;;  %v2082_v63 = vrot.slane %v5158_v17, 2  ;;  %v2044_v17 = vrot.slane %v5663_v7, 2 }
 0x1d8   :  { %3607 = vmatprep.subr.msk.mxu0 %vm73_vm0, %v6364_v30  ;;  %3641 = vmatprep.subr.msk.mxu1 %vm73_vm0, %v5847_v35  ;;  %v5931_v46 = vsel %vm823_vm2, %v2086_v38, %v2087_v32  ;;  %v6377_v30 = vld [vmem:[#allocation32_spill] sm:$0xff]  ;;  %v652_v18 = vpop.f32.mrf.mxu1  ;;  %v6384_v38 = vld [vmem:[#allocation30_spill] sm:$0xff] }
 0x1d9   :  { %v2084_v6 = vrot.slane %v6377_v30, 2  ;;  %v5962_v45 = vsel %vm823_vm2, %v2042_v28, %v2044_v17  ;;  %v5965_v61 = vsel %vm823_vm2, %v2081_v60, %v2082_v63  ;;  %v6387_v17 = vld [vmem:[#allocation31_spill] sm:$0xff]  ;;  %v6389_v60 = vld [vmem:[#allocation24_spill] sm:$0xff] }
 0x1da   :  { %v654_v1 = vpop.f32.mrf.mxu1 }
 0x1db   :  { %3608 = vmatpush3.xpose.msk.msra.mxu0 %vm73_vm0, %v6366_v19  ;;  %3642 = vmatpush3.xpose.msk.msra.mxu1 %vm73_vm0, %v5859_v56  ;;  %v401_v19 = vpop.f32.mrf.mxu0  ;;  %v5949_v22 = vsel %vm823_vm2, %v2082_v63, %v2084_v6  ;;  %v6386_v6 = vld [vmem:[#allocation22_spill] sm:$0xff] }
 0x1dc   :  { %3609 = vmatprep.subr.msk.mxu0 %vm73_vm0, %v6367_v37  ;;  %3643 = vmatprep.subr.msk.mxu1 %vm73_vm0, %v5863_v33  ;;  %v6379_v37 = vld [vmem:[#allocation16_spill] sm:$0xff]  ;;  %v406_v7 = vadd.f32 %v401_v19, %v320_v14  ;;  %v2036_v14 = vrot.slane %v6389_v60, 2 }
 0x1dd   :  { %v403_v32 = vpop.f32.mrf.mxu0 }
 0x1de   :  { %v657_v63 = vadd.f32 %v652_v18, %v406_v7 }
 0x1df   :  { %3610 = vmatpush3.xpose.msk.msra.mxu0 %vm73_vm0, %v6369_v15  ;;  %3644 = vmatpush3.xpose.msk.msra.mxu1 %vm73_vm0, %v5876_v47  ;;  %v322_v15 = vadd.f32 %v321_v40, %v241_v51  ;;  %v2076_v51 = vrot.slane %v6386_v6, 2  ;;  %v2122_v40 = vrot.slane %v5194_v43, 2 }
 0x1e0   :  { %3611 = vmatprep.subr.msk.mxu0 %vm73_vm0, %v6370_v52  ;;  %3645 = vmatprep.subr.msk.mxu1 %vm73_vm0, %v5881_v13  ;;  %v2041_v52 = vrot.slane %v5189_v31, 2  ;;  %v734_v31 = vpop.f32.mrf.mxu0 }
 0x1e1   :  { %v407_v39 = vadd.f32 %v403_v32, %v322_v15  ;;  %v6390_v15 = vld [vmem:[#allocation19_spill] sm:$0xff] }
 0x1e2   :  { %v736_v19 = vpop.f32.mrf.mxu0 }
 0x1e3   :  { %3612 = vmatpush3.xpose.msk.msra.mxu0 %vm73_vm0, %v6372_v8  ;;  %3646 = vmatpush3.xpose.msk.msra.mxu1 %vm73_vm0, %v5893_v59  ;;  %v6382_v8 = vld [vmem:[#allocation3_spill] sm:$0xff] }
 0x1e4   :  { %3613 = vmatprep.subr.msk.mxu0 %vm73_vm0, %v6373_v12  ;;  %3647 = vmatprep.subr.msk.mxu1 %vm73_vm0, %v5897_v48  ;;  %v2077_v12 = vrot.slane %v6382_v8, 2  ;;  %v6392_v8 = vld [vmem:[#allocation35_spill] sm:$0xff] }
 0x1e5   :  { %v2124_v50 = vrot.slane %v6392_v8, 2 }
 0x1e6   :  { %v5983_v30 = vsel %vm823_vm2, %v2077_v12, %v2079_v4  ;;  %v2078_v32 = vsel %vm823_vm2, %v2076_v51, %v2077_v12 }
 0x1e7   :  { %3614 = vmatpush3.xpose.msk.msra.mxu0 %vm73_vm0, %v6375_v57  ;;  %3648 = vmatpush3.xpose.msk.msra.mxu1 %vm73_vm0, %v5910_v0  ;;  %v2037_v57 = vrot.slane %v5348_v27, 2  ;;  %v658_v27 = vadd.f32 %v654_v1, %v407_v39  ;;  %v3732_v39 = vld [vmem:[%s6183_s0 + $0x330] sm:$0xff]  ;;  %v2121_v1 = vrot.slane %v5207_v26, 2 }
 0x1e8   :  { %3615 = vmatprep.subr.msk.mxu0 %vm73_vm0, %v6376_v62  ;;  %3649 = vmatprep.subr.msk.mxu1 %vm73_vm0, %v5915_v11  ;;  %v5979_v62 = vsel %vm823_vm2, %v2041_v52, %v2042_v28 }
 0x1e9   :  { %v2040_v52 = vsel %vm823_vm2, %v2037_v57, %v2039_v9  ;;  %v740_v18 = vadd.f32 %v736_v19, %v658_v27  ;;  %v6394_v9 = vld [vmem:[#allocation21_spill] sm:$0xff]  ;;  %v2125_v19 = vsel %vm823_vm2, %v2122_v40, %v2124_v50 }
 0x1eb   :  { %3616 = vmatpush3.xpose.msk.msra.mxu0 %vm73_vm0, %v6378_v41  ;;  %3650 = vmatpush3.xpose.msk.msra.mxu1 %vm73_vm0, %v5927_v58  ;;  %v816_v41 = vpop.f32.mrf.mxu1 }
 0x1ec   :  { %3617 = vmatprep.subr.msk.mxu0 %vm73_vm0, %v6379_v37  ;;  %3651 = vmatprep.subr.msk.mxu1 %vm73_vm0, %v5931_v46  ;;  %v739_v37 = vadd.f32 %v734_v31, %v657_v63  ;;  %v6393_v31 = vld [vmem:[#allocation33_spill] sm:$0xff]  ;;  %v2038_v63 = vsel %vm823_vm2, %v2036_v14, %v2037_v57  ;;  %v6028_v14 = vld [vmem:[%s6184_s1 + $0x28] sm:$0xff] }
 0x1ed   :  { %v818_v4 = vpop.f32.mrf.mxu1 }
 0x1ee   :  { %v821_v43 = vadd.f32 %v816_v41, %v739_v37  ;;  %v822_v6 = vadd.f32 %v818_v4, %v740_v18  ;;  %v6395_v37 = vld [vmem:[#allocation20_spill] sm:$0xff] }
 0x1ef   :  { %3618 = vmatpush3.xpose.msk.msra.mxu0 %vm73_vm0, %v6380_v21  ;;  %3652 = vmatpush3.xpose.msk.msra.mxu1 %vm73_vm0, %v5945_v36  ;;  %v1049_v21 = vpop.f32.mrf.mxu0  ;;  %v1131_v49 = vpop.f32.mrf.mxu1 }
 0x1f0   :  { %3619 = vmatprep.subr.msk.mxu0 %vm73_vm0, %v6381_v55  ;;  %3653 = vmatprep.subr.msk.mxu1 %vm73_vm0, %v5949_v22  ;;  %v6391_v55 = vld [vmem:[#allocation6_spill] sm:$0xff]  ;;  %v1054_v51 = vadd.f32 %v1049_v21, %v821_v43 }
 0x1f1   :  { %v2119_v7 = vrot.slane %v6391_v55, 2  ;;  %v1051_v12 = vpop.f32.mrf.mxu0  ;;  %v1133_v26 = vpop.f32.mrf.mxu1  ;;  %v6033_v21 = vld [vmem:[%s6184_s1 + $0x40] sm:$0xff] }
 0x1f2   :  { %v1055_v27 = vadd.f32 %v1051_v12, %v822_v6 }
 0x1f3   :  { %3620 = vmatpush3.xpose.msk.msra.mxu0 %vm73_vm0, %v6384_v38  ;;  %3654 = vmatpush3.xpose.msk.msra.mxu1 %vm73_vm0, %v5962_v45  ;;  %v2116_v38 = vrot.slane %v3732_v39, 2 }
 0x1f4   :  { %3621 = vmatprep.subr.msk.mxu0 %vm73_vm0, %v5612_v16  ;;  %3655 = vmatprep.subr.msk.mxu1 %vm73_vm0, %v5965_v61  ;;  %v6388_v16 = vld [vmem:[#allocation2_spill] sm:$0xff] }
 0x1f5   :  { %v2117_v28 = vrot.slane %v6388_v16, 2  ;;  %v2123_v16 = vsel %vm823_vm2, %v2121_v1, %v2122_v40 }
 0x1f7   :  { %3622 = vmatpush3.xpose.msk.msra.mxu0 %vm73_vm0, %v6387_v17  ;;  %3656 = vmatpush3.xpose.msk.msra.mxu1 %vm73_vm0, %v5979_v62  ;;  %v2120_v41 = vsel %vm823_vm2, %v2117_v28, %v2119_v7  ;;  %v1136_v17 = vadd.f32 %v1131_v49, %v1054_v51  ;;  %v2118_v57 = vsel %vm823_vm2, %v2116_v38, %v2117_v28 }
 0x1f8   :  { %3623 = vmatprep.subr.msk.mxu0 %vm73_vm0, %v6390_v15  ;;  %3657 = vmatprep.subr.msk.mxu1 %vm73_vm0, %v5983_v30  ;;  %v1137_v28 = vadd.f32 %v1133_v26, %v1055_v27 }
 0x1fb   :  { %3624 = vmatpush3.xpose.msk.msra.mxu0 %vm73_vm0, %v6393_v31  ;;  %3658 = vmatpush3.xpose.msk.msra.mxu1 %vm73_vm0, %v2040_v52 }
 0x1fc   :  { %3625 = vmatprep.subr.msk.mxu0 %vm73_vm0, %v6394_v9  ;;  %3659 = vmatprep.subr.msk.mxu1 %vm73_vm0, %v2078_v32 }
 0x1ff   :  { %3626 = vmatpush3.xpose.msk.msra.mxu0 %vm73_vm0, %v6395_v37  ;;  %3660 = vmatpush3.xpose.msk.msra.mxu1 %vm73_vm0, %v2038_v63 }
 0x200   :  { %3663 = vmatprep.subr.msk.mxu0 %vm73_vm0, %v2120_v41  ;;  %3697 = vmatprep.subr.msk.mxu1 %vm73_vm0, %v2125_v19 }
 0x202   :  { %v1213_v60 = vpop.f32.mrf.mxu0  ;;  %3628 = vmatmul.mubr.msk.f32.vlgmr.msra.gmra.mxu0 %vm73_vm0, %v5757_v5  ;;  %3662 = vmatmul.mubr.msk.f32.vlgmr.msra.gmra.mxu1 %vm73_vm0, %v5762_v34 }
 0x203   :  { %v1218_v15 = vadd.f32 %v1213_v60, %v1136_v17  ;;  %3664 = vmatpush3.xpose.msk.msra.mxu0 %vm73_vm0, %v5983_v30  ;;  %3698 = vmatpush3.xpose.msk.msra.mxu1 %vm73_vm0, %v5949_v22 }
 0x204   :  { %v1215_v5 = vpop.f32.mrf.mxu0  ;;  %3665 = vmatprep.subr.msk.mxu0 %vm73_vm0, %v2118_v57  ;;  %3699 = vmatprep.subr.msk.mxu1 %vm73_vm0, %v2123_v16 }
 0x205   :  { %1220 = vst [vmem:[%s6185_s2] sm:$0xff] %v1218_v15  ;;  %v1219_v34 = vadd.f32 %v1215_v5, %v1137_v28  ;;  %3695 = vmatprep.mubr.msk.f32.mxu0 %vm73_vm0, %v6028_v14  ;;  %3729 = vmatprep.mubr.msk.f32.mxu1 %vm73_vm0, %v6033_v21  ;;  %v1225_v18 = vmul.f32 %v1218_v15, %v1218_v15 }
 0x207   :  { %1221 = vst [vmem:[%s6185_s2 + $0x8] sm:$0xff] %v1219_v34  ;;  %3666 = vmatpush3.xpose.msk.msra.mxu0 %vm73_vm0, %v2078_v32  ;;  %3700 = vmatpush3.xpose.msk.msra.mxu1 %vm73_vm0, %v5965_v61  ;;  %v1222_v40 = vadd.f32 %v1219_v34, %v1218_v15  ;;  %v1226_v52 = vmul.f32 %v1219_v34, %v1219_v34 }
 0x208   :  { %3667 = vmatprep.subr.msk.mxu0 %vm73_vm0, %v5732_v53  ;;  %3701 = vmatprep.subr.msk.mxu1 %vm73_vm0, %v2120_v41 }
 0x209   :  { %1223 = vadd.xlane.f32.xlu0 %v1222_v40  ;;  %v1227_v55 = vadd.f32 %v1226_v52, %v1225_v18 }
 0x20b   :  { %3668 = vmatpush3.xpose.msk.msra.mxu0 %vm73_vm0, %v5741_v23  ;;  %3702 = vmatpush3.xpose.msk.msra.mxu1 %vm73_vm0, %v5983_v30 }
 0x20c   :  { %3669 = vmatprep.subr.msk.mxu0 %vm73_vm0, %v5746_v20  ;;  %3703 = vmatprep.subr.msk.mxu1 %vm73_vm0, %v2118_v57 }
 0x20d   :  { %1228 = vadd.xlane.f32.xlu0 %v1227_v55 }
 0x20f   :  { %3670 = vmatpush3.xpose.msk.msra.mxu0 %vm73_vm0, %v5771_v25  ;;  %3704 = vmatpush3.xpose.msk.msra.mxu1 %vm73_vm0, %v2078_v32 }
 0x210   :  { %3671 = vmatprep.subr.msk.mxu0 %vm73_vm0, %v5776_v54  ;;  %3705 = vmatprep.subr.msk.mxu1 %vm73_vm0, %v5732_v53 }
 0x213   :  { %3672 = vmatpush3.xpose.msk.msra.mxu0 %vm73_vm0, %v5791_v3  ;;  %3706 = vmatpush3.xpose.msk.msra.mxu1 %vm73_vm0, %v5741_v23 }
 0x214   :  { %3673 = vmatprep.subr.msk.mxu0 %vm73_vm0, %v5795_v42  ;;  %3707 = vmatprep.subr.msk.mxu1 %vm73_vm0, %v5746_v20 }
 0x217   :  { %3674 = vmatpush3.xpose.msk.msra.mxu0 %vm73_vm0, %v5808_v24  ;;  %3708 = vmatpush3.xpose.msk.msra.mxu1 %vm73_vm0, %v5771_v25  ;;  %v1457_v25 = vpop.f32.mrf.mxu1 }
 0x218   :  { %3675 = vmatprep.subr.msk.mxu0 %vm73_vm0, %v5813_v29  ;;  %3709 = vmatprep.subr.msk.mxu1 %vm73_vm0, %v5776_v54 }
 0x21b   :  { %3676 = vmatpush3.xpose.msk.msra.mxu0 %vm73_vm0, %v5825_v2  ;;  %3710 = vmatpush3.xpose.msk.msra.mxu1 %vm73_vm0, %v5791_v3  ;;  %v1459_v3 = vpop.f32.mrf.mxu1 }
 0x21c   :  { %3677 = vmatprep.subr.msk.mxu0 %vm73_vm0, %v5829_v10  ;;  %3711 = vmatprep.subr.msk.mxu1 %vm73_vm0, %v5795_v42 }
 0x21f   :  { %3678 = vmatpush3.xpose.msk.msra.mxu0 %vm73_vm0, %v5842_v44  ;;  %3712 = vmatpush3.xpose.msk.msra.mxu1 %vm73_vm0, %v5808_v24 }
 0x220   :  { %3679 = vmatprep.subr.msk.mxu0 %vm73_vm0, %v5847_v35  ;;  %3713 = vmatprep.subr.msk.mxu1 %vm73_vm0, %v5813_v29 }
 0x223   :  { %3680 = vmatpush3.xpose.msk.msra.mxu0 %vm73_vm0, %v5859_v56  ;;  %3714 = vmatpush3.xpose.msk.msra.mxu1 %vm73_vm0, %v5825_v2 }
 0x224   :  { %3681 = vmatprep.subr.msk.mxu0 %vm73_vm0, %v5863_v33  ;;  %3715 = vmatprep.subr.msk.mxu1 %vm73_vm0, %v5829_v10 }
 0x227   :  { %3682 = vmatpush3.xpose.msk.msra.mxu0 %vm73_vm0, %v5876_v47  ;;  %3716 = vmatpush3.xpose.msk.msra.mxu1 %vm73_vm0, %v5842_v44 }
 0x228   :  { %3683 = vmatprep.subr.msk.mxu0 %vm73_vm0, %v5881_v13  ;;  %3717 = vmatprep.subr.msk.mxu1 %vm73_vm0, %v5847_v35 }
 0x22b   :  { %3684 = vmatpush3.xpose.msk.msra.mxu0 %vm73_vm0, %v5893_v59  ;;  %3718 = vmatpush3.xpose.msk.msra.mxu1 %vm73_vm0, %v5859_v56 }
 0x22c   :  { %3685 = vmatprep.subr.msk.mxu0 %vm73_vm0, %v5897_v48  ;;  %3719 = vmatprep.subr.msk.mxu1 %vm73_vm0, %v5863_v33 }
 0x22f   :  { %3686 = vmatpush3.xpose.msk.msra.mxu0 %vm73_vm0, %v5910_v0  ;;  %3720 = vmatpush3.xpose.msk.msra.mxu1 %vm73_vm0, %v5876_v47 }
 0x230   :  { %3687 = vmatprep.subr.msk.mxu0 %vm73_vm0, %v5915_v11  ;;  %3721 = vmatprep.subr.msk.mxu1 %vm73_vm0, %v5881_v13 }
 0x233   :  { %3688 = vmatpush3.xpose.msk.msra.mxu0 %vm73_vm0, %v5927_v58  ;;  %3722 = vmatpush3.xpose.msk.msra.mxu1 %vm73_vm0, %v5893_v59 }
 0x234   :  { %3689 = vmatprep.subr.msk.mxu0 %vm73_vm0, %v5931_v46  ;;  %3723 = vmatprep.subr.msk.mxu1 %vm73_vm0, %v5897_v48 }
 0x237   :  { %3690 = vmatpush3.xpose.msk.msra.mxu0 %vm73_vm0, %v5945_v36  ;;  %3724 = vmatpush3.xpose.msk.msra.mxu1 %vm73_vm0, %v5910_v0 }
 0x238   :  { %3691 = vmatprep.subr.msk.mxu0 %vm73_vm0, %v5949_v22  ;;  %3725 = vmatprep.subr.msk.mxu1 %vm73_vm0, %v5915_v11 }
 0x23b   :  { %3692 = vmatpush3.xpose.msk.msra.mxu0 %vm73_vm0, %v5962_v45  ;;  %3726 = vmatpush3.xpose.msk.msra.mxu1 %vm73_vm0, %v5927_v58 }
 0x23c   :  { %3693 = vmatprep.subr.msk.mxu0 %vm73_vm0, %v5965_v61  ;;  %3727 = vmatprep.subr.msk.mxu1 %vm73_vm0, %v5931_v46 }
 0x23f   :  { %3694 = vmatpush3.xpose.msk.msra.mxu0 %vm73_vm0, %v5979_v62  ;;  %3728 = vmatpush3.xpose.msk.msra.mxu1 %vm73_vm0, %v5945_v36 }
 0x242   :  { %3696 = vmatmul.mubr.msk.f32.vlgmr.msra.gmra.mxu0 %vm73_vm0, %v6028_v14  ;;  %3730 = vmatmul.mubr.msk.f32.vlgmr.msra.gmra.mxu1 %vm73_vm0, %v6033_v21  ;;  %v1537_v54 = vpop.f32.mrf.mxu0  ;;  %v1618_v42 = vpop.f32.mrf.mxu1 }
 0x243   :  { %v1538_v29 = vadd.f32 %v1537_v54, %v1457_v25 }
 0x244   :  { %v1539_v24 = vpop.f32.mrf.mxu0  ;;  %v1620_v44 = vpop.f32.mrf.mxu1 }
 0x245   :  { %v1540_v10 = vadd.f32 %v1539_v24, %v1459_v3  ;;  %v1623_v35 = vadd.f32 %v1618_v42, %v1538_v29 }
 0x247   :  { %v1624_v47 = vadd.f32 %v1620_v44, %v1540_v10 }
 0x282   :  { %v1867_v2 = vpop.f32.mrf.mxu0  ;;  %v1948_v56 = vpop.f32.mrf.mxu1 }
 0x283   :  { %v1872_v13 = vadd.f32 %v1867_v2, %v1623_v35 }
 0x284   :  { %v1869_v33 = vpop.f32.mrf.mxu0  ;;  %v1950_v0 = vpop.f32.mrf.mxu1 }
 0x285   :  { %v1873_v48 = vadd.f32 %v1869_v33, %v1624_v47  ;;  %v1953_v11 = vadd.f32 %v1948_v56, %v1872_v13 }
 0x287   :  { %v1954_v36 = vadd.f32 %v1950_v0, %v1873_v48 }
 0x292   :  { %v1224_v53 = vpop.xlane.xlu0 %1223 }
 0x296   :  { %v1229_v23 = vpop.xlane.xlu0 %1228 }
 0x297   :  { %v1231_v20 = vsel %vm1230_vm3, %v1224_v53, %v1229_v23 }
 0x298   :  { %1233 = vst.msk [vmem:[%s6186_s3] sm:$0xff] %vm1232_vm4, %v1231_v20 }
 0x2c2   :  { %v2029_v59 = vpop.f32.mrf.mxu0  ;;  %v2260_v58 = vpop.f32.mrf.mxu1 }
 0x2c3   :  { %v2034_v22 = vadd.f32 %v2029_v59, %v1953_v11 }
 0x2c4   :  { %v2031_v46 = vpop.f32.mrf.mxu0  ;;  %v2262_v61 = vpop.f32.mrf.mxu1 }
 0x2c5   :  { %v2035_v45 = vadd.f32 %v2031_v46, %v1954_v36  ;;  %v2265_v62 = vadd.f32 %v2260_v58, %v2034_v22 }
 0x2c7   :  { %v2266_v7 = vadd.f32 %v2262_v61, %v2035_v45 }
 0x302   :  { %v2341_v30 = vpop.f32.mrf.mxu0  ;;  %v2422_v32 = vpop.f32.mrf.mxu1 }
 0x303   :  { %v2346_v8 = vadd.f32 %v2341_v30, %v2265_v62 }
 0x304   :  { %v2343_v50 = vpop.f32.mrf.mxu0  ;;  %v2424_v31 = vpop.f32.mrf.mxu1 }
 0x305   :  { %v2427_v4 = vadd.f32 %v2422_v32, %v2346_v8  ;;  %v2347_v43 = vadd.f32 %v2343_v50, %v2266_v7 }
 0x307   :  { %3116 = vst [vmem:[%s6185_s2 + $0x10] sm:$0xff] %v2427_v4  ;;  %v2428_v39 = vadd.f32 %v2424_v31, %v2347_v43  ;;  %v2435_v49 = vmul.f32 %v2427_v4, %v2427_v4 }
 0x309   :  { %3117 = vst [vmem:[%s6185_s2 + $0x18] sm:$0xff] %v2428_v39  ;;  %v2432_v38 = vadd.f32 %v2428_v39, %v2427_v4  ;;  %v2436_v1 = vmul.f32 %v2428_v39, %v2428_v39 }
 0x30b   :  { %2433 = vadd.xlane.f32.xlu1 %v2432_v38  ;;  %v2437_v12 = vadd.f32 %v2436_v1, %v2435_v49 }
 0x30f   :  { %2438 = vadd.xlane.f32.xlu1 %v2437_v12 }
 0x394   :  { %v2434_v9 = vpop.xlane.xlu1 %2433 }
 0x398   :  { %v2439_v63 = vpop.xlane.xlu1 %2438 }
 0x399   :  { %v2440_v6 = vsel %vm1230_vm3, %v2434_v9, %v2439_v63 }
 0x39a   :  { %3118 = vst.msk [vmem:[%s6186_s3 + $0x8] sm:$0xff] %vm1232_vm4, %v2440_v6 }

</bundles_post_ra>
